<compile_context>
chip_gen: v5e
topology: v5e:2x2
jax: 0.10.0
libtpu: 0.0.40
codegen_flags: <defaults>
</compile_context>

<pallas_src>
import functools

import jax
import jax.numpy as jnp
from jax.experimental import pallas as pl
from jax.experimental.pallas import tpu as pltpu


def _softplus_b05_t14(x):
    # torch.nn.Softplus(beta=0.5, threshold=14):
    #   y = (1/beta) * log(1 + exp(beta * x))  if beta*x <= threshold else x
    bx = 0.5 * x
    safe = jnp.minimum(bx, 14.0)               # avoid overflow in masked branch
    return jnp.where(bx > 14.0, x, 2.0 * jnp.log1p(jnp.exp(safe)))


def veconv_kernel(ed_ref, ef_ref, src_ref, dst_ref, nf_ref,
                  viota_row_ref, viota_col_ref,
                  w1t_ref, b1_ref, w2t_ref, b2_ref, wet_ref, be_ref,
                  node_out_ref, edge_out_ref, *, onehot_dtype):
    e_step = pl.program_id(1)   # reduction ("arbitrary") axis over edge tiles

    # Per-core node_out block is resident across the whole edge reduction for a
    # fixed core-slice c (axis 0): init once per slice.
    @pl.when(e_step == 0)
    def _():
        node_out_ref[...] = jnp.zeros_like(node_out_ref)

    ed = ed_ref[...]                 # (TE, Dp)   f32
    ef = ef_ref[...]                 # (TE, Fp)   f32
    nf = nf_ref[...]                 # (Vp, Fp)   onehot_dtype, resident

    # --- update_dists: Linear -> Softplus(0.5, 14) -> Linear ----------------
    h = jnp.dot(ed, w1t_ref[...], preferred_element_type=jnp.float32) + b1_ref[...]
    h = _softplus_b05_t14(h)
    dist = jnp.dot(h, w2t_ref[...], preferred_element_type=jnp.float32) + b2_ref[...]

    # --- update_edge_feats: Linear -------------------------------------------
    edge_new = jnp.dot(ef, wet_ref[...], preferred_element_type=jnp.float32) + be_ref[...]

    # --- gather node_feats[src] via in-register one-hot matmul (bf16 MXU) ----
    # iotas are tiny resident inputs; only the broadcast-compare runs per step.
    src_oh = (src_ref[...] == viota_row_ref[...]).astype(onehot_dtype)    # (TE, Vp)
    gathered_u = jnp.dot(src_oh, nf, preferred_element_type=jnp.float32)  # (TE, Fp)

    # --- merged message + single scatter matmul (distributivity) -------------
    msg = gathered_u * dist + edge_new                                    # (TE, Fp)

    dst_oh_t = (viota_col_ref[...] == dst_ref[...]).astype(onehot_dtype)  # (Vp, TE)
    # padded edges carry dst == Vp -> all-zero column -> no contribution.
    node_out_ref[...] += jnp.dot(dst_oh_t, msg.astype(onehot_dtype),
                                 preferred_element_type=jnp.float32)

    edge_out_ref[...] = edge_new.astype(edge_out_ref.dtype)


def _round_up(x, m):
    return ((x + m - 1) // m) * m


def _vmem_bytes_estimate(te, v_pad, f_pad, d_pad, onehot_bytes):
    resident = v_pad * f_pad * (onehot_bytes + 4)                 # node_feats + node_out acc
    weights = (d_pad * f_pad + 2 * f_pad * f_pad + 3 * f_pad) * 4
    per_tile = (te * d_pad + 2 * te * f_pad + 2 * te) * 4         # ed, ef, edge_out, src, dst
    onehots = 2 * te * v_pad * onehot_bytes + te * v_pad * 4      # one-hots + rough temporaries
    return resident + weights + 2 * per_tile + onehots            # x2: double-buffered tiles


def veconv(expanded_dists, edge_feats, node_feats, src, dst, params, *,
           edge_tile=512, num_slices=2, onehot_dtype=jnp.bfloat16,
           vmem_budget=40 << 20):
    """Tiled Pallas VEConv.

    Edges are streamed in lane-dense tiles over a (parallel core-slice,
    arbitrary edge-tile) grid; node_feats / weights / the per-slice node
    accumulator are VMEM-resident.  Set onehot_dtype=jnp.float32 if full f32
    fidelity of the gather/scatter is required (slower MXU path).
    """
    V, feats = node_feats.shape
    E, dist_feats = expanded_dists.shape

    f_pad = _round_up(feats, 128)        # lane-dense feats
    d_pad = _round_up(dist_feats, 128)   # lane-dense expanded dists
    v_pad = _round_up(V, 8)              # sublane-aligned node count

    onehot_bytes = jnp.dtype(onehot_dtype).itemsize

    # --- edge tile choice: large (amortize per-step overhead & accumulator
    # RMW) but capped so each (TE, Vp) one-hot stays <= ~2 MiB and the whole
    # working set fits the VMEM budget (v7x has only 64 MiB physical).
    te = min(edge_tile, max(128, _round_up(E, 128)))
    cap = max(128, ((2 << 20) // max(v_pad * onehot_bytes, 1)) // 128 * 128)
    te = max(128, min(te, cap))
    while te > 128 and _vmem_bytes_estimate(te, v_pad, f_pad, d_pad, onehot_bytes) > vmem_budget:
        te -= 128

    e_pad = _round_up(E, te * num_slices)
    ne = e_pad // te
    ne_pc = ne // num_slices             # edge tiles per core-slice

    w1, b1, w2, b2, we, be = params
    # host-side pre-transpose (PyTorch Linear weight is (out, in)) + pad.
    w1t = jnp.pad(w1.T, ((0, d_pad - dist_feats), (0, f_pad - feats)))
    w2t = jnp.pad(w2.T, ((0, f_pad - feats), (0, f_pad - feats)))
    wet = jnp.pad(we.T, ((0, f_pad - feats), (0, f_pad - feats)))
    b1p = jnp.pad(b1, (0, f_pad - feats)).reshape(1, f_pad)
    b2p = jnp.pad(b2, (0, f_pad - feats)).reshape(1, f_pad)
    bep = jnp.pad(be, (0, f_pad - feats)).reshape(1, f_pad)

    ed_p = jnp.pad(expanded_dists, ((0, e_pad - E), (0, d_pad - dist_feats)))
    ef_p = jnp.pad(edge_feats, ((0, e_pad - E), (0, f_pad - feats)))
    # node_feats cast once on the host -> half-size resident buffer, no
    # per-step cast in the kernel.
    nf_p = jnp.pad(node_feats, ((0, v_pad - V), (0, f_pad - feats))).astype(onehot_dtype)

    src_col = jnp.pad(src.astype(jnp.int32), (0, e_pad - E),
                      constant_values=0).reshape(e_pad, 1)
    # padded edges scatter to a non-existent node (v_pad) -> zero one-hot column.
    dst_row = jnp.pad(dst.astype(jnp.int32), (0, e_pad - E),
                      constant_values=v_pad).reshape(1, e_pad)

    viota_row = jnp.arange(v_pad, dtype=jnp.int32).reshape(1, v_pad)
    viota_col = jnp.arange(v_pad, dtype=jnp.int32).reshape(v_pad, 1)

    grid_spec = pltpu.PrefetchScalarGridSpec(
        num_scalar_prefetch=0,
        grid=(num_slices, ne_pc),
        in_specs=[
            pl.BlockSpec((te, d_pad),     lambda c, e: (c * ne_pc + e, 0)),  # expanded_dists
            pl.BlockSpec((te, f_pad),     lambda c, e: (c * ne_pc + e, 0)),  # edge_feats
            pl.BlockSpec((te, 1),         lambda c, e: (c * ne_pc + e, 0)),  # src (column)
            pl.BlockSpec((1, te),         lambda c, e: (0, c * ne_pc + e)),  # dst (row)
            pl.BlockSpec((v_pad, f_pad),  lambda c, e: (0, 0)),              # node_feats (resident)
            pl.BlockSpec((1, v_pad),      lambda c, e: (0, 0)),              # iota row (resident)
            pl.BlockSpec((v_pad, 1),      lambda c, e: (0, 0)),              # iota col (resident)
            pl.BlockSpec((d_pad, f_pad),  lambda c, e: (0, 0)),              # w1^T
            pl.BlockSpec((1, f_pad),      lambda c, e: (0, 0)),              # b1
            pl.BlockSpec((f_pad, f_pad),  lambda c, e: (0, 0)),              # w2^T
            pl.BlockSpec((1, f_pad),      lambda c, e: (0, 0)),              # b2
            pl.BlockSpec((f_pad, f_pad),  lambda c, e: (0, 0)),              # we^T
            pl.BlockSpec((1, f_pad),      lambda c, e: (0, 0)),              # be
        ],
        out_specs=[
            # per-core-slice partial node accumulator (resident across axis 1)
            pl.BlockSpec((v_pad, f_pad),  lambda c, e: (c, 0)),
            # edge_out streamed, lane-dense
            pl.BlockSpec((te, f_pad),     lambda c, e: (c * ne_pc + e, 0)),
        ],
    )

    kernel = functools.partial(veconv_kernel, onehot_dtype=onehot_dtype)

    node_partials, edge_out_p = pl.pallas_call(
        kernel,
        out_shape=(
            jax.ShapeDtypeStruct((num_slices * v_pad, f_pad), jnp.float32),
            jax.ShapeDtypeStruct((e_pad, f_pad), jnp.float32),
        ),
        grid_spec=grid_spec,
        compiler_params=pltpu.CompilerParams(
            # axis 0: core-slices (megacore on v7x); axis 1: edge reduction.
            dimension_semantics=("parallel", "arbitrary"),
            # stay comfortably inside v7x's 64 MiB physical VMEM.
            vmem_limit_bytes=48 << 20,
        ),
    )(ed_p, ef_p, src_col, dst_row, nf_p, viota_row, viota_col,
      w1t, b1p, w2t, b2p, wet, bep)

    node_out = node_partials.reshape(num_slices, v_pad, f_pad).sum(axis=0)
    return node_out[:V, :feats], edge_out_p[:E, :feats]


def veconv_reference(expanded_dists, edge_feats, node_feats, src, dst, params):
    """Pure-JAX reference for correctness check."""
    w1, b1, w2, b2, we, be = params
    h = expanded_dists @ w1.T + b1
    h = _softplus_b05_t14(h)
    dist = h @ w2.T + b2
    edge_new = edge_feats @ we.T + be
    msg0 = node_feats[src] * dist
    V = node_feats.shape[0]
    hv0 = jax.ops.segment_sum(msg0, dst, num_segments=V)
    hv1 = jax.ops.segment_sum(edge_new, dst, num_segments=V)
    return hv0 + hv1, edge_new


if __name__ == "__main__":
    key = jax.random.PRNGKey(0)
    V, E = 8, 16
    dist_feats, feats = 16, 32

    ks = jax.random.split(key, 12)
    # deterministic synthetic parameters (PyTorch Linear: weight (out, in), bias (out,))
    w1 = jax.random.normal(ks[0], (feats, dist_feats), jnp.float32) * 0.1
    b1 = jax.random.normal(ks[1], (feats,), jnp.float32) * 0.1
    w2 = jax.random.normal(ks[2], (feats, feats), jnp.float32) * 0.1
    b2 = jax.random.normal(ks[3], (feats,), jnp.float32) * 0.1
    we = jax.random.normal(ks[4], (feats, feats), jnp.float32) * 0.1
    be = jax.random.normal(ks[5], (feats,), jnp.float32) * 0.1
    params = (w1, b1, w2, b2, we, be)

    node_feats = jax.random.normal(ks[6], (V, feats), jnp.float32)
    edge_feats = jax.random.normal(ks[7], (E, feats), jnp.float32)
    expanded_dists = jax.random.normal(ks[8], (E, dist_feats), jnp.float32)
    src = jax.random.randint(ks[9], (E,), 0, V)
    dst = jax.random.randint(ks[10], (E,), 0, V)

    node_out, edge_out = veconv(expanded_dists, edge_feats, node_feats, src, dst, params)
    jax.block_until_ready((node_out, edge_out))

    node_ref, edge_ref = veconv_reference(expanded_dists, edge_feats, node_feats,
                                          src, dst, params)
    # bf16-level tolerance: the one-hot gather/scatter matmuls run
    # node_feats / msg through bf16 on the MXU (the one-hot selection itself
    # is exact).  Use onehot_dtype=jnp.float32 for tighter fidelity.
    assert jnp.allclose(node_out, node_ref, atol=5e-2, rtol=5e-2)
    assert jnp.allclose(edge_out, edge_ref, atol=1e-2, rtol=1e-2)
    print("KERNEL_OK")
</pallas_src>

<mosaic_0001>
module attributes {stable_mosaic.version = 11 : i64} {
  func.func @veconv_kernel(%arg0: i32, %arg1: i32, %arg2: memref<128x128xf32, #tpu.memory_space<vmem>>, %arg3: memref<128x128xf32, #tpu.memory_space<vmem>>, %arg4: memref<128x1xi32, #tpu.memory_space<vmem>>, %arg5: memref<1x128xi32, #tpu.memory_space<vmem>>, %arg6: memref<8x128xbf16, #tpu.memory_space<vmem>>, %arg7: memref<1x8xi32, #tpu.memory_space<vmem>>, %arg8: memref<8x1xi32, #tpu.memory_space<vmem>>, %arg9: memref<128x128xf32, #tpu.memory_space<vmem>>, %arg10: memref<1x128xf32, #tpu.memory_space<vmem>>, %arg11: memref<128x128xf32, #tpu.memory_space<vmem>>, %arg12: memref<1x128xf32, #tpu.memory_space<vmem>>, %arg13: memref<128x128xf32, #tpu.memory_space<vmem>>, %arg14: memref<1x128xf32, #tpu.memory_space<vmem>>, %arg15: memref<8x128xf32, #tpu.memory_space<vmem>>, %arg16: memref<128x128xf32, #tpu.memory_space<vmem>>) attributes {dimension_semantics = [#tpu.dimension_semantics<parallel>, #tpu.dimension_semantics<arbitrary>], iteration_bounds = array<i64: 2, 1>, scalar_prefetch = 0 : i64, scratch_operands = 0 : i64, tpu.core_type = #tpu.core_type<tc>, window_params = [{transform_indices = @transform_0, window_bounds = array<i64: 128, 128>}, {transform_indices = @transform_1, window_bounds = array<i64: 128, 128>}, {transform_indices = @transform_2, window_bounds = array<i64: 128, 1>}, {transform_indices = @transform_3, window_bounds = array<i64: 1, 128>}, {pipeline_mode = #tpu.pipeline_mode<synchronous>, transform_indices = @transform_4, window_bounds = array<i64: 8, 128>}, {pipeline_mode = #tpu.pipeline_mode<synchronous>, transform_indices = @transform_5, window_bounds = array<i64: 1, 8>}, {pipeline_mode = #tpu.pipeline_mode<synchronous>, transform_indices = @transform_6, window_bounds = array<i64: 8, 1>}, {pipeline_mode = #tpu.pipeline_mode<synchronous>, transform_indices = @transform_7, window_bounds = array<i64: 128, 128>}, {pipeline_mode = #tpu.pipeline_mode<synchronous>, transform_indices = @transform_8, window_bounds = array<i64: 1, 128>}, {pipeline_mode = #tpu.pipeline_mode<synchronous>, transform_indices = @transform_9, window_bounds = array<i64: 128, 128>}, {pipeline_mode = #tpu.pipeline_mode<synchronous>, transform_indices = @transform_10, window_bounds = array<i64: 1, 128>}, {pipeline_mode = #tpu.pipeline_mode<synchronous>, transform_indices = @transform_11, window_bounds = array<i64: 128, 128>}, {pipeline_mode = #tpu.pipeline_mode<synchronous>, transform_indices = @transform_12, window_bounds = array<i64: 1, 128>}, {transform_indices = @transform_13, window_bounds = array<i64: 8, 128>}, {transform_indices = @transform_14, window_bounds = array<i64: 128, 128>}]} {
    %c0_i32 = arith.constant 0 : i32
    %0 = arith.cmpi eq, %arg1, %c0_i32 : i32
    %1 = arith.extui %0 : i1 to i32
    %c0_i32_0 = arith.constant 0 : i32
    %2 = arith.cmpi ne, %1, %c0_i32_0 : i32
    scf.if %2 {
      %cst_40 = arith.constant 0.000000e+00 : f32
      %57 = vector.broadcast %cst_40 : f32 to vector<8x128xf32>
      %c0_41 = arith.constant 0 : index
      %c0_42 = arith.constant 0 : index
      %58 = vector.load %arg15[%c0_41, %c0_42] : memref<8x128xf32, #tpu.memory_space<vmem>>, vector<8x128xf32>
      tpu.vector_store %arg15[%c0_41, %c0_42], %57 {strides = array<i32>} : memref<8x128xf32, #tpu.memory_space<vmem>>, vector<8x128xf32>,
    } else {
    }
    %c0 = arith.constant 0 : index
    %c0_1 = arith.constant 0 : index
    %3 = vector.load %arg2[%c0, %c0_1] : memref<128x128xf32, #tpu.memory_space<vmem>>, vector<128x128xf32>
    %c0_2 = arith.constant 0 : index
    %c0_3 = arith.constant 0 : index
    %4 = vector.load %arg3[%c0_2, %c0_3] : memref<128x128xf32, #tpu.memory_space<vmem>>, vector<128x128xf32>
    %c0_4 = arith.constant 0 : index
    %c0_5 = arith.constant 0 : index
    %5 = vector.load %arg6[%c0_4, %c0_5] : memref<8x128xbf16, #tpu.memory_space<vmem>>, vector<8x128xbf16>
    %c0_6 = arith.constant 0 : index
    %c0_7 = arith.constant 0 : index
    %6 = vector.load %arg9[%c0_6, %c0_7] : memref<128x128xf32, #tpu.memory_space<vmem>>, vector<128x128xf32>
    %cst = arith.constant dense<0.000000e+00> : vector<128x128xf32>
    %7 = tpu.matmul %3, %6, %cst {dimension_numbers = #tpu.dot_dimension_numbers<[1], [0], [0], [1], [0, 0, 1, 1], [], []>} : vector<128x128xf32>, vector<128x128xf32>, vector<128x128xf32> -> vector<128x128xf32>
    %c0_8 = arith.constant 0 : index
    %c0_9 = arith.constant 0 : index
    %8 = vector.load %arg10[%c0_8, %c0_9] : memref<1x128xf32, #tpu.memory_space<vmem>>, vector<1x128xf32>
    %9 = vector.broadcast %8 : vector<1x128xf32> to vector<128x128xf32>
    %10 = arith.addf %7, %9 : vector<128x128xf32>
    %cst_10 = arith.constant 5.000000e-01 : f32
    %11 = vector.broadcast %cst_10 : f32 to vector<128x128xf32>
    %12 = arith.mulf %11, %10 : vector<128x128xf32>
    %cst_11 = arith.constant 1.400000e+01 : f32
    %13 = vector.broadcast %cst_11 : f32 to vector<128x128xf32>
    %14 = arith.minimumf %12, %13 : vector<128x128xf32>
    %cst_12 = arith.constant 1.400000e+01 : f32
    %15 = vector.broadcast %cst_12 : f32 to vector<128x128xf32>
    %16 = arith.cmpf ogt, %12, %15 : vector<128x128xf32>
    %17 = math.exp %14 : vector<128x128xf32>
    %18 = math.log1p %17 : vector<128x128xf32>
    %cst_13 = arith.constant 2.000000e+00 : f32
    %19 = vector.broadcast %cst_13 : f32 to vector<128x128xf32>
    %20 = arith.mulf %19, %18 : vector<128x128xf32>
    %21 = arith.select %16, %10, %20 : vector<128x128xi1>, vector<128x128xf32>
    %c0_14 = arith.constant 0 : index
    %c0_15 = arith.constant 0 : index
    %22 = vector.load %arg11[%c0_14, %c0_15] : memref<128x128xf32, #tpu.memory_space<vmem>>, vector<128x128xf32>
    %cst_16 = arith.constant dense<0.000000e+00> : vector<128x128xf32>
    %23 = tpu.matmul %21, %22, %cst_16 {dimension_numbers = #tpu.dot_dimension_numbers<[1], [0], [0], [1], [0, 0, 1, 1], [], []>} : vector<128x128xf32>, vector<128x128xf32>, vector<128x128xf32> -> vector<128x128xf32>
    %c0_17 = arith.constant 0 : index
    %c0_18 = arith.constant 0 : index
    %24 = vector.load %arg12[%c0_17, %c0_18] : memref<1x128xf32, #tpu.memory_space<vmem>>, vector<1x128xf32>
    %25 = vector.broadcast %24 : vector<1x128xf32> to vector<128x128xf32>
    %26 = arith.addf %23, %25 : vector<128x128xf32>
    %c0_19 = arith.constant 0 : index
    %c0_20 = arith.constant 0 : index
    %27 = vector.load %arg13[%c0_19, %c0_20] : memref<128x128xf32, #tpu.memory_space<vmem>>, vector<128x128xf32>
    %cst_21 = arith.constant dense<0.000000e+00> : vector<128x128xf32>
    %28 = tpu.matmul %4, %27, %cst_21 {dimension_numbers = #tpu.dot_dimension_numbers<[1], [0], [0], [1], [0, 0, 1, 1], [], []>} : vector<128x128xf32>, vector<128x128xf32>, vector<128x128xf32> -> vector<128x128xf32>
    %c0_22 = arith.constant 0 : index
    %c0_23 = arith.constant 0 : index
    %29 = vector.load %arg14[%c0_22, %c0_23] : memref<1x128xf32, #tpu.memory_space<vmem>>, vector<1x128xf32>
    %30 = vector.broadcast %29 : vector<1x128xf32> to vector<128x128xf32>
    %31 = arith.addf %28, %30 : vector<128x128xf32>
    %c0_24 = arith.constant 0 : index
    %c0_25 = arith.constant 0 : index
    %32 = vector.load %arg4[%c0_24, %c0_25] : memref<128x1xi32, #tpu.memory_space<vmem>>, vector<128x1xi32>
    %c0_26 = arith.constant 0 : index
    %c0_27 = arith.constant 0 : index
    %33 = vector.load %arg7[%c0_26, %c0_27] : memref<1x8xi32, #tpu.memory_space<vmem>>, vector<1x8xi32>
    %34 = vector.broadcast %32 : vector<128x1xi32> to vector<128x8xi32>
    %35 = vector.broadcast %33 : vector<1x8xi32> to vector<128x8xi32>
    %36 = arith.cmpi eq, %34, %35 : vector<128x8xi32>
    %37 = arith.extui %36 : vector<128x8xi1> to vector<128x8xi32>
    %38 = arith.sitofp %37 : vector<128x8xi32> to vector<128x8xf32>
    %39 = arith.truncf %38 : vector<128x8xf32> to vector<128x8xbf16>
    %cst_28 = arith.constant dense<0.000000e+00> : vector<128x128xf32>
    %40 = tpu.matmul %39, %5, %cst_28 {dimension_numbers = #tpu.dot_dimension_numbers<[1], [0], [0], [1], [0, 0, 1, 1], [], []>} : vector<128x8xbf16>, vector<8x128xbf16>, vector<128x128xf32> -> vector<128x128xf32>
    %41 = arith.mulf %40, %26 : vector<128x128xf32>
    %42 = arith.addf %41, %31 : vector<128x128xf32>
    %c0_29 = arith.constant 0 : index
    %c0_30 = arith.constant 0 : index
    %43 = vector.load %arg8[%c0_29, %c0_30] : memref<8x1xi32, #tpu.memory_space<vmem>>, vector<8x1xi32>
    %c0_31 = arith.constant 0 : index
    %c0_32 = arith.constant 0 : index
    %44 = vector.load %arg5[%c0_31, %c0_32] : memref<1x128xi32, #tpu.memory_space<vmem>>, vector<1x128xi32>
    %45 = vector.broadcast %43 : vector<8x1xi32> to vector<8x128xi32>
    %46 = vector.broadcast %44 : vector<1x128xi32> to vector<8x128xi32>
    %47 = arith.cmpi eq, %45, %46 : vector<8x128xi32>
    %48 = arith.extui %47 : vector<8x128xi1> to vector<8x128xi32>
    %49 = arith.sitofp %48 : vector<8x128xi32> to vector<8x128xf32>
    %50 = arith.truncf %49 : vector<8x128xf32> to vector<8x128xbf16>
    %c0_33 = arith.constant 0 : index
    %c0_34 = arith.constant 0 : index
    %51 = vector.load %arg15[%c0_33, %c0_34] : memref<8x128xf32, #tpu.memory_space<vmem>>, vector<8x128xf32>
    %52 = arith.truncf %42 : vector<128x128xf32> to vector<128x128xbf16>
    %cst_35 = arith.constant dense<0.000000e+00> : vector<8x128xf32>
    %53 = tpu.matmul %50, %52, %cst_35 {dimension_numbers = #tpu.dot_dimension_numbers<[1], [0], [0], [1], [0, 0, 1, 1], [], []>} : vector<8x128xbf16>, vector<128x128xbf16>, vector<8x128xf32> -> vector<8x128xf32>
    %54 = arith.addf %51, %53 : vector<8x128xf32>
    %c0_36 = arith.constant 0 : index
    %c0_37 = arith.constant 0 : index
    %55 = vector.load %arg15[%c0_36, %c0_37] : memref<8x128xf32, #tpu.memory_space<vmem>>, vector<8x128xf32>
    tpu.vector_store %arg15[%c0_36, %c0_37], %54 {strides = array<i32>} : memref<8x128xf32, #tpu.memory_space<vmem>>, vector<8x128xf32>,
    %c0_38 = arith.constant 0 : index
    %c0_39 = arith.constant 0 : index
    %56 = vector.load %arg16[%c0_38, %c0_39] : memref<128x128xf32, #tpu.memory_space<vmem>>, vector<128x128xf32>
    tpu.vector_store %arg16[%c0_38, %c0_39], %31 {strides = array<i32>} : memref<128x128xf32, #tpu.memory_space<vmem>>, vector<128x128xf32>,
    return
  }
  func.func @transform_0(%arg0: i32, %arg1: i32) -> (i32, i32) {
    %c1_i32 = arith.constant 1 : i32
    %0 = arith.muli %arg0, %c1_i32 : i32
    %1 = arith.addi %0, %arg1 : i32
    %c0_i32 = arith.constant 0 : i32
    %c0_i32_0 = arith.constant 0 : i32
    return %1, %c0_i32 : i32, i32
  }
  func.func @transform_1(%arg0: i32, %arg1: i32) -> (i32, i32) {
    %c1_i32 = arith.constant 1 : i32
    %0 = arith.muli %arg0, %c1_i32 : i32
    %1 = arith.addi %0, %arg1 : i32
    %c0_i32 = arith.constant 0 : i32
    %c0_i32_0 = arith.constant 0 : i32
    return %1, %c0_i32 : i32, i32
  }
  func.func @transform_2(%arg0: i32, %arg1: i32) -> (i32, i32) {
    %c1_i32 = arith.constant 1 : i32
    %0 = arith.muli %arg0, %c1_i32 : i32
    %1 = arith.addi %0, %arg1 : i32
    %c0_i32 = arith.constant 0 : i32
    %c0_i32_0 = arith.constant 0 : i32
    return %1, %c0_i32 : i32, i32
  }
  func.func @transform_3(%arg0: i32, %arg1: i32) -> (i32, i32) {
    %c1_i32 = arith.constant 1 : i32
    %0 = arith.muli %arg0, %c1_i32 : i32
    %1 = arith.addi %0, %arg1 : i32
    %c0_i32 = arith.constant 0 : i32
    %c0_i32_0 = arith.constant 0 : i32
    return %c0_i32, %1 : i32, i32
  }
  func.func @transform_4(%arg0: i32, %arg1: i32) -> (i32, i32) {
    %c0_i32 = arith.constant 0 : i32
    %c0_i32_0 = arith.constant 0 : i32
    %c0_i32_1 = arith.constant 0 : i32
    return %c0_i32, %c0_i32_0 : i32, i32
  }
  func.func @transform_5(%arg0: i32, %arg1: i32) -> (i32, i32) {
    %c0_i32 = arith.constant 0 : i32
    %c0_i32_0 = arith.constant 0 : i32
    %c0_i32_1 = arith.constant 0 : i32
    return %c0_i32, %c0_i32_0 : i32, i32
  }
  func.func @transform_6(%arg0: i32, %arg1: i32) -> (i32, i32) {
    %c0_i32 = arith.constant 0 : i32
    %c0_i32_0 = arith.constant 0 : i32
    %c0_i32_1 = arith.constant 0 : i32
    return %c0_i32, %c0_i32_0 : i32, i32
  }
  func.func @transform_7(%arg0: i32, %arg1: i32) -> (i32, i32) {
    %c0_i32 = arith.constant 0 : i32
    %c0_i32_0 = arith.constant 0 : i32
    %c0_i32_1 = arith.constant 0 : i32
    return %c0_i32, %c0_i32_0 : i32, i32
  }
  func.func @transform_8(%arg0: i32, %arg1: i32) -> (i32, i32) {
    %c0_i32 = arith.constant 0 : i32
    %c0_i32_0 = arith.constant 0 : i32
    %c0_i32_1 = arith.constant 0 : i32
    return %c0_i32, %c0_i32_0 : i32, i32
  }
  func.func @transform_9(%arg0: i32, %arg1: i32) -> (i32, i32) {
    %c0_i32 = arith.constant 0 : i32
    %c0_i32_0 = arith.constant 0 : i32
    %c0_i32_1 = arith.constant 0 : i32
    return %c0_i32, %c0_i32_0 : i32, i32
  }
  func.func @transform_10(%arg0: i32, %arg1: i32) -> (i32, i32) {
    %c0_i32 = arith.constant 0 : i32
    %c0_i32_0 = arith.constant 0 : i32
    %c0_i32_1 = arith.constant 0 : i32
    return %c0_i32, %c0_i32_0 : i32, i32
  }
  func.func @transform_11(%arg0: i32, %arg1: i32) -> (i32, i32) {
    %c0_i32 = arith.constant 0 : i32
    %c0_i32_0 = arith.constant 0 : i32
    %c0_i32_1 = arith.constant 0 : i32
    return %c0_i32, %c0_i32_0 : i32, i32
  }
  func.func @transform_12(%arg0: i32, %arg1: i32) -> (i32, i32) {
    %c0_i32 = arith.constant 0 : i32
    %c0_i32_0 = arith.constant 0 : i32
    %c0_i32_1 = arith.constant 0 : i32
    return %c0_i32, %c0_i32_0 : i32, i32
  }
  func.func @transform_13(%arg0: i32, %arg1: i32) -> (i32, i32) {
    %c0_i32 = arith.constant 0 : i32
    %c0_i32_0 = arith.constant 0 : i32
    return %arg0, %c0_i32 : i32, i32
  }
  func.func @transform_14(%arg0: i32, %arg1: i32) -> (i32, i32) {
    %c1_i32 = arith.constant 1 : i32
    %0 = arith.muli %arg0, %c1_i32 : i32
    %1 = arith.addi %0, %arg1 : i32
    %c0_i32 = arith.constant 0 : i32
    %c0_i32_0 = arith.constant 0 : i32
    return %1, %c0_i32 : i32, i32
  }
}

</mosaic_0001>

<bundles_post_ra>
// kernel: tpu_custom_call.1
= control target key start
LH: loop header
LB: loop body
LE: loop exit
PB: predicated region body
PF: predicated region fallthrough
CT: control target
= control target key end

     0   :  { %s2831_s0 = inlined_call_operand.vmem [shape: f32[256,128], index: 0, kind: input, shape index: {}]   ;;  %s2832_s1 = inlined_call_operand.hbm [shape: f32[256,128], index: 1, kind: input, shape index: {}]   ;;  %s2833_s2 = inlined_call_operand.vmem [shape: s32[256,1], index: 2, kind: input, shape index: {}]   ;;  %s2834_s3 = inlined_call_operand.vmem [shape: s32[1,256], index: 3, kind: input, shape index: {}]   ;;  %s2835_s4 = inlined_call_operand.vmem [shape: bf16[8,128], index: 4, kind: input, shape index: {}]   ;;  %s2836_s5 = inlined_call_operand.vmem [shape: s32[1,8], index: 5, kind: input, shape index: {}]   ;;  %s2837_s6 = inlined_call_operand.vmem [shape: s32[8,1], index: 6, kind: input, shape index: {}]   ;;  %s2838_s7 = inlined_call_operand.hbm [shape: f32[128,128], index: 7, kind: input, shape index: {}]   ;;  %s2839_s8 = inlined_call_operand.vmem [shape: f32[1,128], index: 8, kind: input, shape index: {}]   ;;  %s2840_s9 = inlined_call_operand.hbm [shape: f32[128,128], index: 9, kind: input, shape index: {}]   ;;  %s2841_s10 = inlined_call_operand.vmem [shape: f32[1,128], index: 10, kind: input, shape index: {}]   ;;  %s2842_s11 = inlined_call_operand.hbm [shape: f32[128,128], index: 11, kind: input, shape index: {}]   ;;  %s2843_s12 = inlined_call_operand.vmem [shape: f32[1,128], index: 12, kind: input, shape index: {}]   ;;  %s2844_s13 = inlined_call_operand.hbm [shape: f32[16,128], index: 13, kind: output, shape index: {0}]   ;;  %s2845_s14 = inlined_call_operand.hbm [shape: f32[256,128], index: 14, kind: output, shape index: {1}]  }
   0x1   :  { %2857 = sst [smem:[#allocation23_spill]] %s2831_s0 }
   0x2   :  { %2858 = sst [smem:[#allocation24_spill]] %s2832_s1 }
   0x3   :  { %2859 = sst [smem:[#allocation25_spill]] %s2838_s7 }
   0x4   :  { %2860 = sst [smem:[#allocation26_spill]] %s2840_s9 }
   0x5   :  { %2861 = sst [smem:[#allocation27_spill]] %s2841_s10 }
   0x6   :  { %2862 = sst [smem:[#allocation28_spill]] %s2842_s11 }
   0x7   :  { %2863 = sst [smem:[#allocation29_spill]] %s2843_s12 }
   0x8   :  { %2864 = sst [smem:[#allocation30_spill]] %s2844_s13 }
   0x9   :  { %2865 = sst [smem:[#allocation31_spill]] %s2845_s14 }
   0xa   :  { %20 = vsyncpa [#allocation3], 0 }
   0xb   :  { %22 = vsyncpa [#allocation3 + $0x1], 0 }
   0xc   :  { %23 = vsyncpa [#allocation6], 0 }
   0xd   :  { %24 = vsyncpa [#allocation9], 0 }
   0xe   :  { %25 = vsyncpa [#allocation4], 0 }
   0xf   :  { %27 = vsyncpa [#allocation4 + $0x1], 0 }
  0x10   :  { %28 = vsyncpa [#allocation12], 0 }
  0x11   :  { %30 = vsyncpa [#allocation12 + $0x1], 0  ;;  %s2258_s29 = smov 0   ;;  %s2260_s30 = smov 0  }
  0x12   :  { %s2262_s15 = smov 0   ;;  %s2264_s16 = smov 0  }
  0x13   :  { %s2266_s17 = smov 0   ;;  %s2268_s18 = smov 0  }
  0x14 LB: > { %2866 = sst [smem:[#allocation18_spill]] %s2151_s29  ;;  %s1695_s19 = sadd.s32 4294967295, %s2171_s18   ;;  %s2171_s18 = sphi %s2268_s18, %s36_s18   ;;  %s2167_s17 = sphi %s2266_s17, %s2899_s17   ;;  %s2163_s16 = sphi %s2264_s16, %s2898_s16   ;;  %s2159_s15 = sphi %s2262_s15, %s2897_s15   ;;  %s2155_s30 = sphi %s2260_s30, %s2896_s30   ;;  %s2151_s29 = sphi %s2258_s29, %s2895_s29  }
  0x15   : > { %2867 = sst [smem:[#allocation19_spill]] %s2171_s18  ;;  %s1696_s20 = sadd.s32 4294967294, %s2171_s18  }
  0x16   : > { %p98_p0 = scmp.ne.s32.totalorder %s2155_s30, %s2151_s29  ;;  %p2292_p1 = scmp.eq.s32.totalorder %s1695_s19, 0 }
  0x17   : > { %p2296_p2 = scmp.eq.s32.totalorder %s1695_s19, 1  ;;  %p373_p3 = scmp.eq.s32.totalorder %s1696_s20, 1 }
  0x18   : > { %p2302_p4 = por %p2292_p1, %p98_p0  ;;  %p1697_p5 = scmp.ge.s32.totalorder %s2171_s18, 1 }
  0x19   : > { %p2307_p6 = por %p373_p3, %p98_p0  ;;  %p408_p7 = scmp.lt.s32.totalorder %s2171_s18, 3 }
  0x1a   : > { %s2873_s7 = sld [smem:[#allocation25_spill]]  ;;  %s2173_s19 = smov [#allocation5]  }
  0x1b   : > { %s2871_s24 = scalar_select %p2307_p6, 1, 0 }
  0x1c   : > { %p2315_p8 = pnand %p1697_p5, %p408_p7  ;;  %s430_s20 = sshll.u32 %s2173_s19, 4  ;;  %s431_s20 = int_to_ptr.vmem [resolvable:$true] %s430_s20 }
  0x1d   : > { %2872 = sst [smem:[#allocation20_spill]] %s2871_s24  ;;  %p1701_p11 = scmp.ge.s32.totalorder %s2171_s18, 2 }
  0x1e   : > { %p1770_p9 = pneg %p2315_p8  ;;  %s2876_s9 = sld [smem:[#allocation26_spill]] }
  0x1f   : > { %s2850_s24 = smov 128   ;;  %s2851_s19 = smov 8  }
  0x20   : > { %s428_s27 = sshll.u32 %s2873_s7, 4  ;;  %p2323_p10 = pnand %p1770_p9, %p2292_p1  ;;  %s429_s27 = int_to_ptr.hbm [resolvable:$true] %s428_s27 }
  0x21   : > { %s2176_s13 = smov [#allocation7]   ;;  %s2877_s11 = sld [smem:[#allocation28_spill]] }
  0x22   : > { %1773 = dma.hbm_to_vmem [thread:$0]  (!%p2323_p10), %s429_s27, 2048, %s431_s20, [#allocation6], %s2850_s24, %s2850_s24, %s2851_s19  }
  0x23   : > { %s447_s14 = sshll.u32 %s2176_s13, 4  ;;  %s2177_s26 = smov [#allocation8]   ;;  %s448_s14 = int_to_ptr.vmem [resolvable:$true] %s447_s14 }
  0x24   : > { %s445_s7 = sshll.u32 %s2876_s9, 4  ;;  %s464_s9 = sshll.u32 %s2177_s26, 4  ;;  %s446_s7 = int_to_ptr.hbm [resolvable:$true] %s445_s7  ;;  %s465_s9 = int_to_ptr.vmem [resolvable:$true] %s464_s9 }
  0x25   : > { %1776 = dma.hbm_to_vmem [thread:$0]  (!%p2323_p10), %s446_s7, 2048, %s448_s14, [#allocation6], %s2850_s24, %s2850_s24, %s2851_s19  }
  0x26   : > { %s48_s10 = sadd.s32 1, %s2167_s17  ;;  %s85_s12 = sadd.s32 1, %s2159_s15 }
  0x27   : > { %s462_s25 = sshll.u32 %s2877_s11, 4  ;;  %p50_p12 = scmp.ge.s32.totalorder %s48_s10, 2  ;;  %s463_s25 = int_to_ptr.hbm [resolvable:$true] %s462_s25 }
  0x28   : > { %1779 = dma.hbm_to_vmem [thread:$0]  (!%p2323_p10), %s463_s25, 2048, %s465_s9, [#allocation9], %s2850_s24, %s2850_s24, %s2851_s19  }
  0x29   : > { %p92_p13 = scmp.ne.s32.totalorder %s2159_s15, %s2155_s30  ;;  %p93_p0 = scmp.eq.s32.totalorder %s2171_s18, 0 }
  0x2a   : > { %s2901_s10 = smov (%p50_p12, %s48_s10), 0  ;;  %p1794_p7 = scmp.lt.s32.totalorder %s2171_s18, 2 }
  0x2b   : > { %2878 = sst [smem:[#allocation21_spill]] %s2901_s10  ;;  %p2356_p3 = por %p93_p0, %p92_p13 }
  0x2c   : > { %p2362_p5 = por %p2296_p2, %p92_p13  ;;  %s82_s14 = ssub.s32 %s2167_s17, %s2901_s10 }
  0x2d   : > { %p83_p9 = scmp.eq.s32.totalorder %s82_s14, 0  ;;  %s492_s9 = sand.u32 1, %s2159_s15  }
  0x2e   : > { %s2880_s13 = scalar_select %p2362_p5, 1, 0 }
  0x2f   : > { %s1702_s29 = sshll.u32 %s492_s9, 7  ;;  %s1750_s20 = sshll.u32 %s2167_s17, 7 }
  0x30   : > { %2881 = sst [smem:[#allocation22_spill]] %s2880_s13  ;;  %s496_s19 = scalar_lea.vmem [#allocation2], %s1702_s29 }
  0x31   : > { %s2371_s27 = scalar_select %p83_p9, %s2159_s15, %s85_s12  }
  0x32   : > { %s2882_s1 = sld [smem:[#allocation24_spill]]  ;;  %s505_s11 = sshll.u32 %s496_s19, 4  ;;  %s506_s11 = int_to_ptr.vmem [resolvable:$true] %s505_s11 }
  0x33   : > { %p1781_p2 = pnand %p1794_p7, %p2356_p3  ;;  %s493_s13 = scalar_lea.sflag [#allocation3], %s492_s9 }
  0x34   : > { %s2883_s10 = smov 8   ;;  %s2884_s18 = smov 128  }
  0x35   : > { %s2385_s12 = sand.u32 (!%p2315_p8), 1, %s2155_s30  }
  0x36   : > { %536 = sbr.rel (%p2315_p8) target bundleno = 679 (0x2a7), region = 72  ;;  %s539_s19 = scalar_lea.sflag (!%p2315_p8), [#allocation3], %s2385_s12 }
  0x38   : > { %s502_s24 = scalar_lea.hbm %s2882_s1, %s1750_s20 }
  0x39   : > { %s503_s22 = sshll.u32 %s502_s24, 4  ;;  %s1706_s24 = sshll.u32 (!%p2315_p8), %s2385_s12, 7  ;;  %s504_s22 = int_to_ptr.hbm [resolvable:$true] %s503_s22 }
  0x3a   : > { %1783 = dma.hbm_to_vmem [thread:$0]  (!%p1781_p2), %s504_s22, 2048, %s506_s11, %s493_s13, %s2884_s18, %s2884_s18, %s2883_s10  }
  0x3b   : > { %s2391_s7 = scalar_lea.vmem [#allocation2], %s1706_s24 }
  0x3c   : > { %2130 = dma.done.wait (%p2302_p4), %s539_s19, 2048  }
  0x3d   : > { %2132 = vsyncadd (%p2302_p4), %s539_s19, 4294965248 }
  0x3e   : > { %2134 = dma.done.wait (%p2292_p1), [#allocation6], 4096  }
  0x3f   : > { %2136 = vsyncadd (%p2292_p1), [#allocation6], 4294963200 }
  0x40   : > { %2138 = dma.done.wait (%p2292_p1), [#allocation9], 2048  }
  0x41   : > { %2140 = vsyncadd (%p2292_p1), [#allocation9], 4294965248  ;;  %s1712_s11 = sshll.u32 %s2163_s16, 4  ;;  %v2178_v0 = vmov 0   ;;  %v703_v2 = vld [vmem:[#allocation5 + $0x78] sm:$0xff]  ;;  %v702_v3 = vld [vmem:[#allocation5 + $0x70] sm:$0xff] }
  0x42   : > { %1857 = vset.pattern.permute.xlu0 %v2178_v0  ;;  %p626_p8 = scmp.lt.s32.totalorder %s1712_s11, 31  ;;  %1858 = vset.pattern.permute.xlu1 %v2178_v0  ;;  %v701_v4 = vld [vmem:[#allocation5 + $0x68] sm:$0xff]  ;;  %v700_v6 = vld [vmem:[#allocation5 + $0x60] sm:$0xff]  ;;  %v699_v8 = vld [vmem:[#allocation5 + $0x58] sm:$0xff]  ;;  %s2885_s0 = sld [smem:[#allocation23_spill]]  ;;  %vm1346_vm0 = vcmask 1043456  }
  0x43   : > { %1859 = vset.pattern.permute.xlu2 %v2178_v0  ;;  %708 = vmatpush.msra.mxu0 %v703_v2  ;;  %v698_v9 = vld [vmem:[#allocation5 + $0x50] sm:$0xff]  ;;  %v697_v11 = vld [vmem:[#allocation5 + $0x48] sm:$0xff]  ;;  %v696_v12 = vld [vmem:[#allocation5 + $0x40] sm:$0xff]  ;;  %p643_p1 = scmp.lt.s32.totalorder %s2163_s16, 1  ;;  %v2179_v53 = vmov 0.0   ;;  %vm1321_vm3 = vcmask 64512  }
  0x44   : > { %s2903_s11 = smov (!%p626_p8, %s1712_s11), 31  ;;  %v695_v13 = vld [vmem:[#allocation5 + $0x38] sm:$0xff]  ;;  %v694_v15 = vld [vmem:[#allocation5 + $0x30] sm:$0xff]  ;;  %v693_v18 = vld [vmem:[#allocation5 + $0x28] sm:$0xff]  ;;  %s2886_s13 = sld [smem:[#allocation29_spill]] }
  0x45   : > { %s1713_s18 = sshll.u32 %s2903_s11, 3  ;;  %709 = vmatpush.msra.mxu0 %v702_v3  ;;  %v692_v19 = vld [vmem:[#allocation5 + $0x20] sm:$0xff]  ;;  %v691_v20 = vld [vmem:[#allocation5 + $0x18] sm:$0xff]  ;;  %v690_v22 = vld [vmem:[#allocation5 + $0x10] sm:$0xff]  ;;  %s2887_s29 = sld [smem:[#allocation27_spill]] }
  0x46   : > { %s2414_s10 = scalar_lea.vmem %s2833_s2, %s1713_s18  ;;  %v689_v25 = vld [vmem:[#allocation5 + $0x8] sm:$0xff]  ;;  %v688_v26 = vld [vmem:[#allocation5] sm:$0xff]  ;;  %v1129_v50 = vld [vmem:[#allocation8 + $0x78] sm:$0xff]  ;;  %s1751_s11 = sshll.u32 %s2163_s16, 7 }
  0x47   : > { %v1199_v1 = vld [vmem:[%s2414_s10] sm:$0xff]  ;;  %v1201_v5 = vld [vmem:[%s2414_s10 + $0x10] sm:$0xff]  ;;  %710 = vmatpush.msra.mxu0 %v701_v4  ;;  %v1200_v7 = vld [vmem:[%s2414_s10 + $0x8] sm:$0xff]  ;;  %s2448_s20 = scalar_select %p643_p1, %s2163_s16, 1  ;;  %1134 = vmatpush.msra.mxu2 %v1129_v50 }
  0x48   : > { %1217 = vperm.xlu0 %1857, %v1199_v1   ;;  %1223 = vperm.xlu1 %1858, %v1201_v5   ;;  %v1202_v10 = vld [vmem:[%s2414_s10 + $0x18] sm:$0xff]  ;;  %v1205_v14 = vld [vmem:[%s2414_s10 + $0x30] sm:$0xff]  ;;  %v1203_v16 = vld [vmem:[%s2414_s10 + $0x20] sm:$0xff]  ;;  %s2431_s14 = scalar_lea.vmem %s2885_s0, %s1713_s18  ;;  %s2889_s28 = sld [smem:[#allocation31_spill]] }
  0x49   : > { %711 = vmatpush.msra.mxu0 %v700_v6  ;;  %v1206_v17 = vld [vmem:[%s2414_s10 + $0x38] sm:$0xff]  ;;  %1229 = vperm.xlu2 %1859, %v1203_v16   ;;  %v1208_v21 = vld [vmem:[%s2414_s10 + $0x48] sm:$0xff]  ;;  %v1209_v24 = vld [vmem:[%s2414_s10 + $0x50] sm:$0xff]  ;;  %s645_s22 = scalar_lea.vmem %s2834_s3, %s2448_s20 }
  0x4a   : > { %v1204_v23 = vld [vmem:[%s2414_s10 + $0x28] sm:$0xff]  ;;  %v655_v27 = vld [vmem:[%s2431_s14] sm:$0xff]  ;;  %v1214_v32 = vld [vmem:[%s2414_s10 + $0x78] sm:$0xff] }
  0x4b   : > { %712 = vmatpush.msra.mxu0 %v699_v8  ;;  %v1211_v28 = vld [vmem:[%s2414_s10 + $0x60] sm:$0xff]  ;;  %v1212_v30 = vld [vmem:[%s2414_s10 + $0x68] sm:$0xff]  ;;  %v1210_v33 = vld [vmem:[%s2414_s10 + $0x58] sm:$0xff] }
  0x4c   : > { %v1207_v29 = vld [vmem:[%s2414_s10 + $0x40] sm:$0xff]  ;;  %v656_v31 = vld [vmem:[%s2431_s14 + $0x8] sm:$0xff]  ;;  %v657_v35 = vld [vmem:[%s2431_s14 + $0x10] sm:$0xff] }
  0x4d   : > { %713 = vmatpush.msra.mxu0 %v698_v9  ;;  %v1431_v34 = vld [vmem:[%s2837_s6] sm:$0xff]  ;;  %v1213_v36 = vld [vmem:[%s2414_s10 + $0x70] sm:$0xff]  ;;  %v658_v37 = vld [vmem:[%s2431_s14 + $0x18] sm:$0xff] }
  0x4e   : > { %v659_v38 = vld [vmem:[%s2431_s14 + $0x20] sm:$0xff]  ;;  %v660_v39 = vld [vmem:[%s2431_s14 + $0x28] sm:$0xff]  ;;  %v661_v40 = vld [vmem:[%s2431_s14 + $0x30] sm:$0xff]  ;;  %s1513_s20 = scalar_lea.hbm %s2889_s28, %s1751_s11 }
  0x4f   : > { %714 = vmatpush.msra.mxu0 %v697_v11  ;;  %v662_v41 = vld [vmem:[%s2431_s14 + $0x38] sm:$0xff]  ;;  %v687_v42 = vld [vmem:[%s2835_s4] sm:$0xf]  ;;  %v664_v45 = vld [vmem:[%s2431_s14 + $0x48] sm:$0xff]  ;;  %s1516_s10 = sshll.u32 %s1513_s20, 4  ;;  %s1517_s10 = int_to_ptr.hbm [resolvable:$true] %s1516_s10 }
  0x50   : > { %1220 = vperm.xlu0 %1857, %v1200_v7   ;;  %1226 = vperm.xlu1 %1858, %v1202_v10   ;;  %v1348_v43 = vsel %vm1346_vm0, %v687_v42, 0  ;;  %v663_v44 = vld [vmem:[%s2431_s14 + $0x40] sm:$0xff]  ;;  %v665_v46 = vld [vmem:[%s2431_s14 + $0x50] sm:$0xff]  ;;  %v666_v49 = vld [vmem:[%s2431_s14 + $0x58] sm:$0xff]  ;;  %s2063_s21 = sshra.s32 %s1517_s10, 4  ;;  %s2064_s21 = int_to_ptr.hbm [resolvable:$true] %s2063_s21 }
  0x51   : > { %715 = vmatpush.msra.mxu0 %v696_v12  ;;  %1232 = vperm.xlu2 %1859, %v1204_v23   ;;  %v2467_v48 = vld [vmem:[%s2836_s5] ss:$0 sm:$0xff]  ;;  %v1128_v51 = vld [vmem:[#allocation8 + $0x70] sm:$0xff]  ;;  %v1044_v56 = vld [vmem:[#allocation7 + $0x78] sm:$0xff]  ;;  %p2070_p13 = scmp.lt.s32.totalorder %s2064_s21, %s2889_s28 }
  0x52   : > { %1357 = vmatpush.bf16.msra.mxu3 %v1348_v43  ;;  %1135 = vmatpush.msra.mxu2 %v1128_v51  ;;  %v1127_v57 = vld [vmem:[#allocation8 + $0x68] sm:$0xff]  ;;  %v667_v59 = vld [vmem:[%s2431_s14 + $0x60] sm:$0xff]  ;;  %v1043_v61 = vld [vmem:[#allocation7 + $0x70] sm:$0xff] }
  0x53   : > { %716 = vmatpush.msra.mxu0 %v695_v13  ;;  %1049 = vmatpush.msra.mxu1 %v1044_v56  ;;  %v1126_v62 = vld [vmem:[#allocation8 + $0x60] sm:$0xff]  ;;  %v1042_v63 = vld [vmem:[#allocation7 + $0x68] sm:$0xff]  ;;  %v1125_v0 = vld [vmem:[#allocation8 + $0x58] sm:$0xff] }
  0x54   : > { %1136 = vmatpush.msra.mxu2 %v1127_v57  ;;  %v1041_v1 = vld [vmem:[#allocation7 + $0x60] sm:$0xff]  ;;  %v1124_v2 = vld [vmem:[#allocation8 + $0x50] sm:$0xff]  ;;  %v1040_v4 = vld [vmem:[#allocation7 + $0x58] sm:$0xff] }
  0x55   : > { %717 = vmatpush.msra.mxu0 %v694_v15  ;;  %1050 = vmatpush.msra.mxu1 %v1043_v61  ;;  %v1123_v5 = vld [vmem:[#allocation8 + $0x48] sm:$0xff]  ;;  %v1039_v7 = vld [vmem:[#allocation7 + $0x50] sm:$0xff]  ;;  %v1122_v8 = vld [vmem:[#allocation8 + $0x40] sm:$0xff] }
  0x56   : > { %1137 = vmatpush.msra.mxu2 %v1126_v62  ;;  %v668_v6 = vld [vmem:[%s2431_s14 + $0x68] sm:$0xff]  ;;  %v1121_v10 = vld [vmem:[#allocation8 + $0x38] sm:$0xff]  ;;  %v1037_v13 = vld [vmem:[#allocation7 + $0x40] sm:$0xff] }
  0x57   : > { %718 = vmatpush.msra.mxu0 %v693_v18  ;;  %1051 = vmatpush.msra.mxu1 %v1042_v63  ;;  %v1038_v9 = vld [vmem:[#allocation7 + $0x48] sm:$0xff]  ;;  %v1117_v23 = vld [vmem:[#allocation8 + $0x18] sm:$0xff]  ;;  %v673_v50 = vld [vmem:[%s2391_s7 + $0x10] sm:$0xff] }
  0x58   : > { %1235 = vperm.xlu0 %1857, %v1205_v14   ;;  %1238 = vperm.xlu1 %1858, %v1206_v17   ;;  %v1120_v14 = vld [vmem:[#allocation8 + $0x30] sm:$0xff]  ;;  %v1036_v17 = vld [vmem:[#allocation7 + $0x38] sm:$0xff]  ;;  %v1119_v18 = vld [vmem:[#allocation8 + $0x28] sm:$0xff] }
  0x59   : > { %719 = vmatpush.msra.mxu0 %v692_v19  ;;  %1241 = vperm.xlu2 %1859, %v1207_v29   ;;  %v669_v19 = vld [vmem:[%s2431_s14 + $0x70] sm:$0xff]  ;;  %v670_v29 = vld [vmem:[%s2431_s14 + $0x78] sm:$0xff]  ;;  %s2681_s14 = scalar_lea.vmem [#allocation11], %s1706_s24 }
  0x5a   : > { %1138 = vmatpush.msra.mxu2 %v1125_v0  ;;  %1052 = vmatpush.msra.mxu1 %v1041_v1  ;;  %v674_v63 = vld [vmem:[%s2391_s7 + $0x18] sm:$0xff] }
  0x5b   : > { %720 = vmatpush.msra.mxu0 %v691_v20  ;;  %v1035_v20 = vld [vmem:[#allocation7 + $0x30] sm:$0xff] }
  0x5c   : > { %1139 = vmatpush.msra.mxu2 %v1124_v2  ;;  %1053 = vmatpush.msra.mxu1 %v1040_v4 }
  0x5d   : > { %721 = vmatpush.msra.mxu0 %v690_v22  ;;  %v1034_v22 = vld [vmem:[#allocation7 + $0x28] sm:$0xff] }
  0x5e   : > { %1140 = vmatpush.msra.mxu2 %v1123_v5  ;;  %1054 = vmatpush.msra.mxu1 %v1039_v7 }
  0x5f   : > { %722 = vmatpush.msra.mxu0 %v689_v25  ;;  %v1116_v25 = vld [vmem:[#allocation8 + $0x10] sm:$0xff] }
  0x60   : > { %1244 = vperm.xlu0 %1857, %v1208_v21   ;;  %1247 = vperm.xlu1 %1858, %v1209_v24   ;;  %v1118_v21 = vld [vmem:[#allocation8 + $0x20] sm:$0xff] }
  0x61   : > { %723 = vmatpush.msra.mxu0 %v688_v26  ;;  %1250 = vperm.xlu2 %1859, %v1210_v33   ;;  %v1033_v24 = vld [vmem:[#allocation7 + $0x20] sm:$0xff]  ;;  %v1032_v26 = vld [vmem:[#allocation7 + $0x18] sm:$0xff]  ;;  %v1030_v33 = vld [vmem:[#allocation7 + $0x8] sm:$0xff] }
  0x62   : > { %724 = vmatmul.f32.vlgmr.msra.gmra.mxu0 %v655_v27  ;;  %1141 = vmatpush.msra.mxu2 %v1122_v8  ;;  %v1115_v27 = vld [vmem:[#allocation8 + $0x8] sm:$0xff] }
  0x63   : > { %1055 = vmatpush.msra.mxu1 %v1038_v9 }
  0x64   : > { %1142 = vmatpush.msra.mxu2 %v1121_v10 }
  0x65   : > { %1056 = vmatpush.msra.mxu1 %v1037_v13 }
  0x66   : > { %1143 = vmatpush.msra.mxu2 %v1120_v14 }
  0x67   : > { %1057 = vmatpush.msra.mxu1 %v1036_v17 }
  0x68   : > { %1253 = vperm.xlu0 %1857, %v1211_v28   ;;  %1256 = vperm.xlu1 %1858, %v1212_v30   ;;  %v1031_v30 = vld [vmem:[#allocation7 + $0x10] sm:$0xff] }
  0x69   : > { %1259 = vperm.xlu2 %1859, %v1213_v36   ;;  %1144 = vmatpush.msra.mxu2 %v1119_v18  ;;  %v2492_v36 = vld [vmem:[%s2839_s8] ss:$0 sm:$0xff] }
  0x6a   : > { %727 = vmatmul.f32.gmra.mxu0 %v656_v31  ;;  %1058 = vmatpush.msra.mxu1 %v1035_v20  ;;  %v1114_v31 = vld [vmem:[#allocation8] sm:$0xff] }
  0x6b   : > { %1145 = vmatpush.msra.mxu2 %v1118_v21 }
  0x6c   : > { %1059 = vmatpush.msra.mxu1 %v1034_v22 }
  0x6d   : > { %1146 = vmatpush.msra.mxu2 %v1117_v23 }
  0x6e   : > { %1060 = vmatpush.msra.mxu1 %v1033_v24 }
  0x6f   : > { %1147 = vmatpush.msra.mxu2 %v1116_v25 }
  0x70   : > { %1262 = vperm.xlu0 %1857, %v1214_v32   ;;  %1434 = vperm.xlu1 %1858, %v1431_v34   ;;  %v671_v32 = vld [vmem:[%s2391_s7] sm:$0xff] }
  0x71   : > { %1061 = vmatpush.msra.mxu1 %v1032_v26  ;;  %1148 = vmatpush.msra.mxu2 %v1115_v27 }
  0x72   : > { %730 = vmatmul.f32.gmra.mxu0 %v657_v35 }
  0x73   : > { %1062 = vmatpush.msra.mxu1 %v1031_v30  ;;  %1149 = vmatpush.msra.mxu2 %v1114_v31 }
  0x74   : > { %1150 = vmatmul.f32.vlgmr.msra.gmra.mxu2 %v671_v32 }
  0x75   : > { %1063 = vmatpush.msra.mxu1 %v1030_v33 }
  0x7a   : > { %733 = vmatmul.f32.gmra.mxu0 %v658_v37  ;;  %v1029_v37 = vld [vmem:[#allocation7] sm:$0xff] }
  0x7b   : > { %1064 = vmatpush.msra.mxu1 %v1029_v37 }
  0x82   : > { %736 = vmatmul.f32.gmra.mxu0 %v659_v38 }
  0x8a   : > { %739 = vmatmul.f32.gmra.mxu0 %v660_v39 }
  0x92   : > { %742 = vmatmul.f32.gmra.mxu0 %v661_v40 }
  0x9a   : > { %745 = vmatmul.f32.gmra.mxu0 %v662_v41  ;;  %v672_v41 = vld [vmem:[%s2391_s7 + $0x8] sm:$0xff] }
  0x9b   : > { %1153 = vmatmul.f32.gmra.mxu2 %v672_v41 }
  0xa2   : > { %748 = vmatmul.f32.gmra.mxu0 %v663_v44 }
  0xa3   : > { %v1230_v15 = vpop.permute.xlu2 %1229  ;;  %1156 = vmatmul.f32.gmra.mxu2 %v673_v50 }
  0xa4   : > { %vm1269_vm6 = vcmp.eq.s32.totalorder %v1230_v15, %v2467_v48  ;;  %v675_v15 = vld [vmem:[%s2391_s7 + $0x20] sm:$0xff] }
  0xa5   : > { %v1720_v34 = vsel %vm1269_vm6, 1.0, %v2179_v53 }
  0xaa   : > { %751 = vmatmul.f32.gmra.mxu0 %v664_v45 }
  0xab   : > { %v1233_v28 = vpop.permute.xlu2 %1232  ;;  %1159 = vmatmul.f32.gmra.mxu2 %v674_v63 }
  0xac   : > { %vm1270_vm7 = vcmp.eq.s32.totalorder %v1233_v28, %v2467_v48 }
  0xad   : > { %v1721_v35 = vsel %vm1270_vm7, 1.0, %v2179_v53 }
  0xae   : > { %v1315_v38 = vpack.c.bf16 %v1721_v35, %v1720_v34  ;;  %v676_v35 = vld [vmem:[%s2391_s7 + $0x28] sm:$0xff] }
  0xb2   : > { %754 = vmatmul.f32.gmra.mxu0 %v665_v46 }
  0xb3   : > { %v1242_v5 = vpop.permute.xlu2 %1241  ;;  %1162 = vmatmul.f32.gmra.mxu2 %v675_v15 }
  0xb4   : > { %vm1273_vm10 = vcmp.eq.s32.totalorder %v1242_v5, %v2467_v48 }
  0xb5   : > { %v1724_v18 = vsel %vm1273_vm10, 1.0, %v2179_v53 }
  0xba   : > { %v1218_v47 = vpop.permute.xlu0 %1217  ;;  %757 = vmatmul.f32.gmra.mxu0 %v666_v49  ;;  %v1224_v52 = vpop.permute.xlu1 %1223 }
  0xbb   : > { %vm1265_vm1 = vcmp.eq.s32.totalorder %v1218_v47, %v2467_v48  ;;  %vm1267_vm4 = vcmp.eq.s32.totalorder %v1224_v52, %v2467_v48  ;;  %1165 = vmatmul.f32.gmra.mxu2 %v676_v35 }
  0xbc   : > { %v1716_v54 = vsel %vm1265_vm1, 1.0, %v2179_v53  ;;  %v1718_v11 = vsel %vm1267_vm4, 1.0, %v2179_v53 }
  0xc2   : > { %v1221_v55 = vpop.permute.xlu0 %1220  ;;  %760 = vmatmul.f32.gmra.mxu0 %v667_v59  ;;  %v1227_v3 = vpop.permute.xlu1 %1226 }
  0xc3   : > { %vm1266_vm2 = vcmp.eq.s32.totalorder %v1221_v55, %v2467_v48  ;;  %vm1268_vm5 = vcmp.eq.s32.totalorder %v1227_v3, %v2467_v48 }
  0xc4   : > { %v1717_v58 = vsel %vm1266_vm2, 1.0, %v2179_v53  ;;  %v1719_v12 = vsel %vm1268_vm5, 1.0, %v2179_v53 }
  0xc5   : > { %v1313_v60 = vpack.c.bf16 %v1717_v58, %v1716_v54  ;;  %v1314_v16 = vpack.c.bf16 %v1719_v12, %v1718_v11 }
  0xc7   : > { %1732 = vmatmul.msk.bf16.vlgmr.msra.gmra.mxu3 %vm1321_vm3, %v1313_v60 }
  0xca   : > { %763 = vmatmul.f32.gmra.mxu0 %v668_v6  ;;  %v1236_v44 = vpop.permute.xlu0 %1235  ;;  %v1239_v46 = vpop.permute.xlu1 %1238 }
  0xcb   : > { %vm1271_vm8 = vcmp.eq.s32.totalorder %v1236_v44, %v2467_v48  ;;  %vm1272_vm9 = vcmp.eq.s32.totalorder %v1239_v46, %v2467_v48 }
  0xcc   : > { %v1722_v52 = vsel %vm1271_vm8, 1.0, %v2179_v53  ;;  %v1723_v54 = vsel %vm1272_vm9, 1.0, %v2179_v53 }
  0xcd   : > { %v1316_v57 = vpack.c.bf16 %v1723_v54, %v1722_v52 }
  0xd2   : > { %766 = vmatmul.f32.gmra.mxu0 %v669_v19  ;;  %v1245_v11 = vpop.permute.xlu0 %1244 }
  0xd3   : > { %vm1274_vm11 = vcmp.eq.s32.totalorder %v1245_v11, %v2467_v48 }
  0xd4   : > { %v1725_v20 = vsel %vm1274_vm11, 1.0, %v2179_v53 }
  0xd5   : > { %v1317_v28 = vpack.c.bf16 %v1725_v20, %v1724_v18 }
  0xd7   : > { %1733 = vmatmul.msk.bf16.gmra.mxu3 %vm1321_vm3, %v1314_v16 }
  0xda   : > { %769 = vmatmul.f32.gmra.mxu0 %v670_v29 }
  0xdf   : > { %v725_v39 = vpop.f32.mrf.mxu0 }
  0xe0   : > { %v2495_v40 = vadd.f32 %v2492_v36, %v725_v39 }
  0xe2   : > { %v773_v42 = vmul.f32 0.5, %v2495_v40 }
  0xe4   : > { %v789_v43 = vmin.f32 %v773_v42, 14.0  ;;  %vm805_vm13 = vcmp.gt.f32.partialorder %v773_v42, 14.0 }
  0xe6   : > { %v821_v45 = vmul.f32 1.442695, %v789_v43 }
  0xe7   : > { %1734 = vmatmul.msk.bf16.gmra.mxu3 %vm1321_vm3, %v1315_v38  ;;  %v728_v47 = vpop.f32.mrf.mxu0 }
  0xe8   : > { %1865 = vpow2.f32 %v821_v45  ;;  %v2503_v49 = vadd.f32 %v2492_v36, %v728_v47  ;;  %v1251_v45 = vpop.permute.xlu2 %1250 }
  0xe9   : > { %vm1276_vm0 = vcmp.eq.s32.totalorder %v1251_v45, %v2467_v48 }
  0xea   : > { %v2507_v51 = vmul.f32 0.5, %v2503_v49 }
  0xec   : > { %v790_v55 = vmin.f32 %v2507_v51, 14.0  ;;  %vm806_vm15 = vcmp.gt.f32.partialorder %v2507_v51, 14.0 }
  0xee   : > { %v1866_v56 = vpop.eup %1865  ;;  %v823_v58 = vmul.f32 1.442695, %v790_v55  ;;  %v1248_v55 = vpop.permute.xlu1 %1247 }
  0xef   : > { %v731_v59 = vpop.f32.mrf.mxu0  ;;  %v853_v60 = vadd.f32 1.0, %v1866_v56  ;;  %v856_v61 = vmul.f32 -0.5, %v1866_v56  ;;  %v859_v3 = vand.u32 2147483647, %v1866_v56  ;;  %vm1275_vm1 = vcmp.eq.s32.totalorder %v1248_v55, %v2467_v48 }
  0xf0   : > { %1867 = vpow2.f32 %v823_v58  ;;  %v2513_v62 = vadd.f32 %v2492_v36, %v731_v59  ;;  %v1726_v63 = vsel %vm1275_vm1, 1.0, %v2179_v53 }
  0xf1   : > { %1869 = vlog2.f32 %v853_v60  ;;  %v857_v1 = vadd.f32 1.0, %v856_v61  ;;  %vm860_vm12 = vcmp.lt.f32.partialorder %v859_v3, 0.0004427343  ;;  %v1727_v60 = vsel %vm1276_vm0, 1.0, %v2179_v53 }
  0xf2   : > { %v2517_v0 = vmul.f32 0.5, %v2513_v62 }
  0xf3   : > { %v858_v9 = vmul.f32 %v1866_v56, %v857_v1 }
  0xf4   : > { %v791_v2 = vmin.f32 %v2517_v0, 14.0  ;;  %vm807_vm4 = vcmp.gt.f32.partialorder %v2517_v0, 14.0  ;;  %v678_v0 = vld [vmem:[%s2391_s7 + $0x38] sm:$0xff] }
  0xf6   : > { %v1868_v4 = vpop.eup %1867  ;;  %v825_v6 = vmul.f32 1.442695, %v791_v2 }
  0xf7   : > { %1735 = vmatmul.msk.bf16.gmra.mxu3 %vm1321_vm3, %v1316_v57  ;;  %v1870_v7 = vpop.eup %1869  ;;  %v734_v8 = vpop.f32.mrf.mxu0  ;;  %v862_v10 = vadd.f32 1.0, %v1868_v4  ;;  %v865_v14 = vmul.f32 -0.5, %v1868_v4  ;;  %v868_v24 = vand.u32 2147483647, %v1868_v4 }
  0xf8   : > { %1871 = vpow2.f32 %v825_v6  ;;  %v2523_v12 = vadd.f32 %v2492_v36, %v734_v8  ;;  %v855_v13 = vmul.f32 0.6931472, %v1870_v7  ;;  %v1318_v8 = vpack.c.bf16 %v1727_v60, %v1726_v63  ;;  %v1260_v63 = vpop.permute.xlu2 %1259 }
  0xf9   : > { %1873 = vlog2.f32 %v862_v10  ;;  %v866_v22 = vadd.f32 1.0, %v865_v14  ;;  %vm869_vm14 = vcmp.lt.f32.partialorder %v868_v24, 0.0004427343  ;;  %v1254_v24 = vpop.permute.xlu0 %1253 }
  0xfa   : > { %v2528_v16 = vmul.f32 0.5, %v2523_v12  ;;  %v861_v17 = vsel %vm860_vm12, %v858_v9, %v855_v13  ;;  %vm1277_vm7 = vcmp.eq.s32.totalorder %v1254_v24, %v2467_v48 }
  0xfb   : > { %v997_v19 = vmul.f32 2.0, %v861_v17  ;;  %v867_v34 = vmul.f32 %v1868_v4, %v866_v22 }
  0xfc   : > { %v792_v21 = vmin.f32 %v2528_v16, 14.0  ;;  %vm808_vm6 = vcmp.gt.f32.partialorder %v2528_v16, 14.0 }
  0xfd   : > { %v1013_v23 = vsel %vm805_vm13, %v2495_v40, %v997_v19  ;;  %vm1279_vm13 = vcmp.eq.s32.totalorder %v1260_v63, %v2467_v48 }
  0xfe   : > { %v1872_v25 = vpop.eup %1871  ;;  %v827_v26 = vmul.f32 1.442695, %v792_v21  ;;  %1065 = vmatmul.f32.vlgmr.msra.gmra.mxu1 %v1013_v23 }
  0xff   : > { %v1874_v27 = vpop.eup %1873  ;;  %v737_v29 = vpop.f32.mrf.mxu0  ;;  %v871_v30 = vadd.f32 1.0, %v1872_v25  ;;  %v874_v31 = vmul.f32 -0.5, %v1872_v25  ;;  %v877_v43 = vand.u32 2147483647, %v1872_v25 }
 0x100   : > { %1875 = vpow2.f32 %v827_v26  ;;  %v2537_v32 = vadd.f32 %v2492_v36, %v737_v29  ;;  %v864_v33 = vmul.f32 0.6931472, %v1874_v27 }
 0x101   : > { %1877 = vlog2.f32 %v871_v30  ;;  %v875_v40 = vadd.f32 1.0, %v874_v31  ;;  %vm878_vm2 = vcmp.lt.f32.partialorder %v877_v43, 0.0004427343 }
 0x102   : > { %v2541_v37 = vmul.f32 0.5, %v2537_v32  ;;  %v870_v38 = vsel %vm869_vm14, %v867_v34, %v864_v33 }
 0x103   : > { %v998_v39 = vmul.f32 2.0, %v870_v38  ;;  %v876_v52 = vmul.f32 %v1872_v25, %v875_v40  ;;  %v1257_v25 = vpop.permute.xlu1 %1256  ;;  %v1728_v38 = vsel %vm1277_vm7, 1.0, %v2179_v53 }
 0x104   : > { %v793_v41 = vmin.f32 %v2541_v37, 14.0  ;;  %vm1278_vm8 = vcmp.eq.s32.totalorder %v1257_v25, %v2467_v48  ;;  %vm809_vm10 = vcmp.gt.f32.partialorder %v2541_v37, 14.0  ;;  %v680_v37 = vld [vmem:[%s2391_s7 + $0x48] sm:$0xff] }
 0x105   : > { %v1014_v42 = vsel %vm806_vm15, %v2503_v49, %v998_v39  ;;  %v677_v49 = vld [vmem:[%s2391_s7 + $0x30] sm:$0xff]  ;;  %v1729_v40 = vsel %vm1278_vm8, 1.0, %v2179_v53 }
 0x106   : > { %v1876_v44 = vpop.eup %1875  ;;  %v829_v46 = vmul.f32 1.442695, %v793_v41  ;;  %1068 = vmatmul.f32.gmra.mxu1 %v1014_v42  ;;  %1168 = vmatmul.f32.gmra.mxu2 %v677_v49 }
 0x107   : > { %1736 = vmatmul.msk.bf16.gmra.mxu3 %vm1321_vm3, %v1317_v28  ;;  %v1878_v47 = vpop.eup %1877  ;;  %v740_v50 = vpop.f32.mrf.mxu0  ;;  %v880_v54 = vadd.f32 1.0, %v1876_v44  ;;  %v883_v57 = vmul.f32 -0.5, %v1876_v44  ;;  %v886_v4 = vand.u32 2147483647, %v1876_v44 }
 0x108   : > { %1879 = vpow2.f32 %v829_v46  ;;  %v2549_v56 = vadd.f32 %v2492_v36, %v740_v50  ;;  %v873_v51 = vmul.f32 0.6931472, %v1878_v47  ;;  %v1319_v50 = vpack.c.bf16 %v1729_v40, %v1728_v38 }
 0x109   : > { %1881 = vlog2.f32 %v880_v54  ;;  %v884_v2 = vadd.f32 1.0, %v883_v57  ;;  %vm887_vm5 = vcmp.lt.f32.partialorder %v886_v4, 0.0004427343 }
 0x10a   : > { %v2554_v58 = vmul.f32 0.5, %v2549_v56  ;;  %v879_v59 = vsel %vm878_vm2, %v876_v52, %v873_v51 }
 0x10b   : > { %v999_v61 = vmul.f32 2.0, %v879_v59  ;;  %v885_v15 = vmul.f32 %v1876_v44, %v884_v2 }
 0x10c   : > { %v794_v1 = vmin.f32 %v2554_v58, 14.0  ;;  %vm810_vm12 = vcmp.gt.f32.partialorder %v2554_v58, 14.0 }
 0x10d   : > { %v1015_v3 = vsel %vm807_vm4, %v2513_v62, %v999_v61 }
 0x10e   : > { %v1880_v5 = vpop.eup %1879  ;;  %v831_v6 = vmul.f32 1.442695, %v794_v1  ;;  %1071 = vmatmul.f32.gmra.mxu1 %v1015_v3  ;;  %1171 = vmatmul.f32.gmra.mxu2 %v678_v0 }
 0x10f   : > { %v1882_v7 = vpop.eup %1881  ;;  %v743_v9 = vpop.f32.mrf.mxu0  ;;  %v889_v10 = vadd.f32 1.0, %v1880_v5  ;;  %v892_v11 = vmul.f32 -0.5, %v1880_v5  ;;  %v895_v22 = vand.u32 2147483647, %v1880_v5 }
 0x110   : > { %1883 = vpow2.f32 %v831_v6  ;;  %v2564_v13 = vadd.f32 %v2492_v36, %v743_v9  ;;  %v882_v14 = vmul.f32 0.6931472, %v1882_v7 }
 0x111   : > { %1885 = vlog2.f32 %v889_v10  ;;  %v893_v19 = vadd.f32 1.0, %v892_v11  ;;  %vm896_vm9 = vcmp.lt.f32.partialorder %v895_v22, 0.0004427343 }
 0x112   : > { %v2568_v62 = vmul.f32 0.5, %v2564_v13  ;;  %v888_v17 = vsel %vm887_vm5, %v885_v15, %v882_v14 }
 0x113   : > { %v1000_v18 = vmul.f32 2.0, %v888_v17  ;;  %v894_v29 = vmul.f32 %v1880_v5, %v893_v19  ;;  %v1263_v5 = vpop.permute.xlu0 %1262  ;;  %v1730_v17 = vsel %vm1279_vm13, 1.0, %v2179_v53 }
 0x114   : > { %v795_v20 = vmin.f32 %v2568_v62, 14.0  ;;  %vm1280_vm14 = vcmp.eq.s32.totalorder %v1263_v5, %v2467_v48  ;;  %vm811_vm0 = vcmp.gt.f32.partialorder %v2568_v62, 14.0  ;;  %v682_v62 = vld [vmem:[%s2391_s7 + $0x58] sm:$0xff] }
 0x115   : > { %v1016_v21 = vsel %vm808_vm6, %v2523_v12, %v1000_v18  ;;  %v679_v12 = vld [vmem:[%s2391_s7 + $0x40] sm:$0xff]  ;;  %v1731_v19 = vsel %vm1280_vm14, 1.0, %v2179_v53 }
 0x116   : > { %v1884_v23 = vpop.eup %1883  ;;  %v833_v26 = vmul.f32 1.442695, %v795_v20  ;;  %1074 = vmatmul.f32.gmra.mxu1 %v1016_v21  ;;  %1174 = vmatmul.f32.gmra.mxu2 %v679_v12 }
 0x117   : > { %1737 = vmatmul.msk.bf16.gmra.mxu3 %vm1321_vm3, %v1318_v8  ;;  %v1886_v27 = vpop.eup %1885  ;;  %v746_v28 = vpop.f32.mrf.mxu0  ;;  %v898_v30 = vadd.f32 1.0, %v1884_v23  ;;  %v901_v33 = vmul.f32 -0.5, %v1884_v23  ;;  %v904_v44 = vand.u32 2147483647, %v1884_v23 }
 0x118   : > { %1887 = vpow2.f32 %v833_v26  ;;  %v2576_v31 = vadd.f32 %v2492_v36, %v746_v28  ;;  %v891_v16 = vmul.f32 0.6931472, %v1886_v27  ;;  %v1320_v26 = vpack.c.bf16 %v1731_v19, %v1730_v17 }
 0x119   : > { %1889 = vlog2.f32 %v898_v30  ;;  %v902_v42 = vadd.f32 1.0, %v901_v33  ;;  %vm905_vm11 = vcmp.lt.f32.partialorder %v904_v44, 0.0004427343 }
 0x11a   : > { %v2581_v34 = vmul.f32 0.5, %v2576_v31  ;;  %v897_v35 = vsel %vm896_vm9, %v894_v29, %v891_v16 }
 0x11b   : > { %v1001_v39 = vmul.f32 2.0, %v897_v35  ;;  %v903_v49 = vmul.f32 %v1884_v23, %v902_v42 }
 0x11c   : > { %v796_v41 = vmin.f32 %v2581_v34, 14.0  ;;  %vm812_vm2 = vcmp.gt.f32.partialorder %v2581_v34, 14.0  ;;  %v683_v34 = vld [vmem:[%s2391_s7 + $0x60] sm:$0xff] }
 0x11d   : > { %v1017_v43 = vsel %vm809_vm10, %v2537_v32, %v1001_v39 }
 0x11e   : > { %v1888_v45 = vpop.eup %1887  ;;  %v835_v46 = vmul.f32 1.442695, %v796_v41  ;;  %1077 = vmatmul.f32.gmra.mxu1 %v1017_v43  ;;  %1177 = vmatmul.f32.gmra.mxu2 %v680_v37 }
 0x11f   : > { %v1890_v47 = vpop.eup %1889  ;;  %v749_v52 = vpop.f32.mrf.mxu0  ;;  %v907_v54 = vadd.f32 1.0, %v1888_v45  ;;  %v910_v55 = vmul.f32 -0.5, %v1888_v45  ;;  %v913_v3 = vand.u32 2147483647, %v1888_v45 }
 0x120   : > { %1891 = vpow2.f32 %v835_v46  ;;  %v2589_v51 = vadd.f32 %v2492_v36, %v749_v52  ;;  %v900_v57 = vmul.f32 0.6931472, %v1890_v47 }
 0x121   : > { %1893 = vlog2.f32 %v907_v54  ;;  %v911_v61 = vadd.f32 1.0, %v910_v55  ;;  %vm914_vm15 = vcmp.lt.f32.partialorder %v913_v3, 0.0004427343 }
 0x122   : > { %v2593_v32 = vmul.f32 0.5, %v2589_v51  ;;  %v906_v59 = vsel %vm905_vm11, %v903_v49, %v900_v57 }
 0x123   : > { %v1002_v60 = vmul.f32 2.0, %v906_v59  ;;  %v912_v9 = vmul.f32 %v1888_v45, %v911_v61 }
 0x124   : > { %v797_v1 = vmin.f32 %v2593_v32, 14.0  ;;  %vm813_vm4 = vcmp.gt.f32.partialorder %v2593_v32, 14.0 }
 0x125   : > { %v1018_v2 = vsel %vm810_vm12, %v2549_v56, %v1002_v60  ;;  %v681_v56 = vld [vmem:[%s2391_s7 + $0x50] sm:$0xff] }
 0x126   : > { %v1892_v4 = vpop.eup %1891  ;;  %v837_v6 = vmul.f32 1.442695, %v797_v1  ;;  %1080 = vmatmul.f32.gmra.mxu1 %v1018_v2  ;;  %1180 = vmatmul.f32.gmra.mxu2 %v681_v56 }
 0x127   : > { %1738 = vmatmul.msk.bf16.gmra.mxu3 %vm1321_vm3, %v1319_v50  ;;  %v1894_v7 = vpop.eup %1893  ;;  %v752_v8 = vpop.f32.mrf.mxu0  ;;  %v916_v10 = vadd.f32 1.0, %v1892_v4  ;;  %v919_v58 = vmul.f32 -0.5, %v1892_v4  ;;  %v922_v22 = vand.u32 2147483647, %v1892_v4 }
 0x128   : > { %1895 = vpow2.f32 %v837_v6  ;;  %v2601_v11 = vadd.f32 %v2492_v36, %v752_v8  ;;  %v909_v14 = vmul.f32 0.6931472, %v1894_v7  ;;  %v684_v7 = vld [vmem:[%s2391_s7 + $0x68] sm:$0xff] }
 0x129   : > { %1897 = vlog2.f32 %v916_v10  ;;  %v920_v21 = vadd.f32 1.0, %v919_v58  ;;  %vm923_vm1 = vcmp.lt.f32.partialorder %v922_v22, 0.0004427343 }
 0x12a   : > { %v2606_v15 = vmul.f32 0.5, %v2601_v11  ;;  %v915_v0 = vsel %vm914_vm15, %v912_v9, %v909_v14 }
 0x12b   : > { %v1003_v18 = vmul.f32 2.0, %v915_v0  ;;  %v921_v16 = vmul.f32 %v1892_v4, %v920_v21  ;;  %v685_v21 = vld [vmem:[%s2391_s7 + $0x70] sm:$0xff] }
 0x12c   : > { %v798_v20 = vmin.f32 %v2606_v15, 14.0  ;;  %vm814_vm6 = vcmp.gt.f32.partialorder %v2606_v15, 14.0 }
 0x12d   : > { %v1019_v48 = vsel %vm811_vm0, %v2564_v13, %v1003_v18 }
 0x12e   : > { %v1896_v23 = vpop.eup %1895  ;;  %v839_v24 = vmul.f32 1.442695, %v798_v20  ;;  %1083 = vmatmul.f32.gmra.mxu1 %v1019_v48  ;;  %1183 = vmatmul.f32.gmra.mxu2 %v682_v62 }
 0x12f   : > { %v1898_v25 = vpop.eup %1897  ;;  %v755_v27 = vpop.f32.mrf.mxu0  ;;  %v925_v28 = vadd.f32 1.0, %v1896_v23  ;;  %v928_v29 = vmul.f32 -0.5, %v1896_v23  ;;  %v931_v40 = vand.u32 2147483647, %v1896_v23 }
 0x130   : > { %1899 = vpow2.f32 %v839_v24  ;;  %v2614_v53 = vadd.f32 %v2492_v36, %v755_v27  ;;  %v918_v30 = vmul.f32 0.6931472, %v1898_v25 }
 0x131   : > { %1901 = vlog2.f32 %v925_v28  ;;  %v929_v35 = vadd.f32 1.0, %v928_v29 }
 0x132   : > { %v2618_v13 = vmul.f32 0.5, %v2614_v53  ;;  %v924_v33 = vsel %vm923_vm1, %v921_v16, %v918_v30 }
 0x133   : > { %v1004_v12 = vmul.f32 2.0, %v924_v33  ;;  %v930_v45 = vmul.f32 %v1896_v23, %v929_v35  ;;  %v686_v35 = vld [vmem:[%s2391_s7 + $0x78] sm:$0xff]  ;;  %s1487_s7 = scalar_lea.sflag [#allocation12], %s2385_s12 }
 0x134   : > { %v799_v38 = vmin.f32 %v2618_v13, 14.0  ;;  %vm815_vm8 = vcmp.gt.f32.partialorder %v2618_v13, 14.0 }
 0x135   : > { %v1020_v39 = vsel %vm812_vm2, %v2576_v31, %v1004_v12 }
 0x136   : > { %v1900_v41 = vpop.eup %1899  ;;  %v841_v42 = vmul.f32 1.442695, %v799_v38  ;;  %1086 = vmatmul.f32.gmra.mxu1 %v1020_v39  ;;  %1186 = vmatmul.f32.gmra.mxu2 %v683_v34 }
 0x137   : > { %1739 = vmatmul.msk.bf16.gmra.mxu3 %vm1321_vm3, %v1320_v26  ;;  %v1902_v43 = vpop.eup %1901  ;;  %v758_v44 = vpop.f32.mrf.mxu0  ;;  %v934_v46 = vadd.f32 1.0, %v1900_v41  ;;  %v937_v52 = vmul.f32 -0.5, %v1900_v41  ;;  %vm932_vm3 = vcmp.lt.f32.partialorder %v931_v40, 0.0004427343  ;;  %v940_v59 = vand.u32 2147483647, %v1900_v41 }
 0x138   : > { %1903 = vpow2.f32 %v841_v42  ;;  %v2625_v47 = vadd.f32 %v2492_v36, %v758_v44  ;;  %v927_v50 = vmul.f32 0.6931472, %v1902_v43 }
 0x139   : > { %1905 = vlog2.f32 %v934_v46  ;;  %v938_v49 = vadd.f32 1.0, %v937_v52  ;;  %vm941_vm5 = vcmp.lt.f32.partialorder %v940_v59, 0.0004427343 }
 0x13a   : > { %v2629_v54 = vmul.f32 0.5, %v2625_v47  ;;  %v933_v31 = vsel %vm932_vm3, %v930_v45, %v927_v50 }
 0x13b   : > { %v1005_v55 = vmul.f32 2.0, %v933_v31  ;;  %v939_v6 = vmul.f32 %v1900_v41, %v938_v49 }
 0x13c   : > { %v800_v57 = vmin.f32 %v2629_v54, 14.0  ;;  %vm816_vm10 = vcmp.gt.f32.partialorder %v2629_v54, 14.0 }
 0x13d   : > { %v1021_v37 = vsel %vm813_vm4, %v2589_v51, %v1005_v55 }
 0x13e   : > { %v1904_v60 = vpop.eup %1903  ;;  %v843_v61 = vmul.f32 1.442695, %v800_v57  ;;  %1089 = vmatmul.f32.gmra.mxu1 %v1021_v37  ;;  %1189 = vmatmul.f32.gmra.mxu2 %v684_v7 }
 0x13f   : > { %v1906_v63 = vpop.eup %1905  ;;  %v761_v1 = vpop.f32.mrf.mxu0  ;;  %v943_v2 = vadd.f32 1.0, %v1904_v60  ;;  %v946_v3 = vmul.f32 -0.5, %v1904_v60  ;;  %v949_v58 = vand.u32 2147483647, %v1904_v60 }
 0x140   : > { %1907 = vpow2.f32 %v843_v61  ;;  %v2635_v4 = vadd.f32 %v2492_v36, %v761_v1  ;;  %v936_v5 = vmul.f32 0.6931472, %v1906_v63 }
 0x141   : > { %1909 = vlog2.f32 %v943_v2  ;;  %v947_v9 = vadd.f32 1.0, %v946_v3  ;;  %vm950_vm7 = vcmp.lt.f32.partialorder %v949_v58, 0.0004427343  ;;  %v1151_v2 = vpop.f32.mrf.mxu2 }
 0x142   : > { %v2639_v32 = vmul.f32 0.5, %v2635_v4  ;;  %v942_v51 = vsel %vm941_vm5, %v939_v6, %v936_v5 }
 0x143   : > { %v1006_v8 = vmul.f32 2.0, %v942_v51  ;;  %v948_v19 = vmul.f32 %v1904_v60, %v947_v9 }
 0x144   : > { %v801_v10 = vmin.f32 %v2639_v32, 14.0  ;;  %vm817_vm12 = vcmp.gt.f32.partialorder %v2639_v32, 14.0 }
 0x145   : > { %v1022_v14 = vsel %vm814_vm6, %v2601_v11, %v1006_v8 }
 0x146   : > { %v1908_v56 = vpop.eup %1907  ;;  %v845_v0 = vmul.f32 1.442695, %v801_v10  ;;  %1092 = vmatmul.f32.gmra.mxu1 %v1022_v14  ;;  %1192 = vmatmul.f32.gmra.mxu2 %v685_v21 }
 0x147   : > { %v1910_v17 = vpop.eup %1909  ;;  %v764_v18 = vpop.f32.mrf.mxu0  ;;  %v952_v20 = vadd.f32 1.0, %v1908_v56  ;;  %v955_v23 = vmul.f32 -0.5, %v1908_v56  ;;  %v958_v28 = vand.u32 2147483647, %v1908_v56 }
 0x148   : > { %1911 = vpow2.f32 %v845_v0  ;;  %v2646_v48 = vadd.f32 %v2492_v36, %v764_v18  ;;  %v945_v22 = vmul.f32 0.6931472, %v1910_v17 }
 0x149   : > { %1913 = vlog2.f32 %v952_v20  ;;  %v956_v26 = vadd.f32 1.0, %v955_v23  ;;  %vm959_vm9 = vcmp.lt.f32.partialorder %v958_v28, 0.0004427343  ;;  %v1154_v17 = vpop.f32.mrf.mxu2 }
 0x14a   : > { %v2649_v15 = vmul.f32 0.5, %v2646_v48  ;;  %v951_v11 = vsel %vm950_vm7, %v948_v19, %v945_v22  ;;  %v1359_v51 = vpop.f32.mrf.mxu3 }
 0x14b   : > { %v1007_v24 = vmul.f32 2.0, %v951_v11  ;;  %v957_v40 = vmul.f32 %v1908_v56, %v956_v26 }
 0x14c   : > { %v802_v25 = vmin.f32 %v2649_v15, 14.0  ;;  %vm818_vm14 = vcmp.gt.f32.partialorder %v2649_v15, 14.0 }
 0x14d   : > { %v1023_v27 = vsel %vm815_vm8, %v2614_v53, %v1007_v24 }
 0x14e   : > { %v1912_v29 = vpop.eup %1911  ;;  %v847_v30 = vmul.f32 1.442695, %v802_v25  ;;  %1095 = vmatmul.f32.gmra.mxu1 %v1023_v27  ;;  %1195 = vmatmul.f32.gmra.mxu2 %v686_v35 }
 0x14f   : > { %v1914_v16 = vpop.eup %1913  ;;  %v767_v62 = vpop.f32.mrf.mxu0  ;;  %v961_v33 = vadd.f32 1.0, %v1912_v29  ;;  %v964_v12 = vmul.f32 -0.5, %v1912_v29  ;;  %v967_v45 = vand.u32 2147483647, %v1912_v29 }
 0x150   : > { %1915 = vpow2.f32 %v847_v30  ;;  %v2656_v38 = vadd.f32 %v2492_v36, %v767_v62  ;;  %v954_v39 = vmul.f32 0.6931472, %v1914_v16 }
 0x151   : > { %1917 = vlog2.f32 %v961_v33  ;;  %v965_v42 = vadd.f32 1.0, %v964_v12  ;;  %vm968_vm11 = vcmp.lt.f32.partialorder %v967_v45, 0.0004427343  ;;  %v1157_v28 = vpop.f32.mrf.mxu2 }
 0x152   : > { %v2659_v13 = vmul.f32 0.5, %v2656_v38  ;;  %v960_v53 = vsel %vm959_vm9, %v957_v40, %v954_v39  ;;  %v1361_v24 = vpop.f32.mrf.mxu3 }
 0x153   : > { %v1008_v41 = vmul.f32 2.0, %v960_v53  ;;  %v966_v31 = vmul.f32 %v1912_v29, %v965_v42 }
 0x154   : > { %v803_v43 = vmin.f32 %v2659_v13, 14.0  ;;  %vm819_vm0 = vcmp.gt.f32.partialorder %v2659_v13, 14.0  ;;  %v2698_v13 = vld [vmem:[%s2887_s29] ss:$0 sm:$0xff]  ;;  %s2069_s29 = scalar_lea.hbm %s2889_s28, 256 }
 0x155   : > { %v1024_v44 = vsel %vm816_vm10, %v2625_v47, %v1008_v41 }
 0x156   : > { %v1916_v46 = vpop.eup %1915  ;;  %v849_v50 = vmul.f32 1.442695, %v803_v43  ;;  %1098 = vmatmul.f32.gmra.mxu1 %v1024_v44 }
 0x157   : > { %v1918_v52 = vpop.eup %1917  ;;  %v770_v34 = vpop.f32.mrf.mxu0  ;;  %v970_v55 = vadd.f32 1.0, %v1916_v46  ;;  %v973_v37 = vmul.f32 -0.5, %v1916_v46  ;;  %v976_v1 = vand.u32 2147483647, %v1916_v46 }
 0x158   : > { %1919 = vpow2.f32 %v849_v50  ;;  %v2665_v57 = vadd.f32 %v2492_v36, %v770_v34  ;;  %v963_v49 = vmul.f32 0.6931472, %v1918_v52  ;;  %v2675_v36 = vld [vmem:[%s2886_s13] ss:$0 sm:$0xff]  ;;  %s2065_s13 = scalar_lea.hbm %s2064_s21, 128 }
 0x159   : > { %1921 = vlog2.f32 %v970_v55  ;;  %v974_v61 = vadd.f32 1.0, %v973_v37  ;;  %v1152_v6 = vadd.f32 %v2675_v36, %v1151_v2  ;;  %vm977_vm13 = vcmp.lt.f32.partialorder %v976_v1, 0.0004427343  ;;  %p2066_p4 = scmp.ne.s32.totalorder %s2064_s21, %s2065_s13  ;;  %p2071_p0 = scmp.lt.s32.totalorder %s2069_s29, %s2065_s13 }
 0x15a   : > { %v2668_v54 = vmul.f32 0.5, %v2665_v57  ;;  %v969_v47 = vsel %vm968_vm11, %v966_v31, %v963_v49  ;;  %v1155_v19 = vadd.f32 %v2675_v36, %v1154_v17  ;;  %v1158_v29 = vadd.f32 %v2675_v36, %v1157_v28  ;;  %v1364_v12 = vpop.f32.mrf.mxu3 }
 0x15b   : > { %v1009_v59 = vmul.f32 2.0, %v969_v47  ;;  %v975_v9 = vmul.f32 %v1916_v46, %v974_v61  ;;  %1465 = vst [vmem:[%s2681_s14] sm:$0xff] %v1152_v6  ;;  %p2067_p10 = pnand %p2066_p4, %p2362_p5  ;;  %p2072_p3 = por %p2071_p0, %p2070_p13 }
 0x15c   : > { %v804_v60 = vmin.f32 %v2668_v54, 14.0  ;;  %1466 = vst [vmem:[%s2681_s14 + $0x8] sm:$0xff] %v1155_v19  ;;  %vm820_vm2 = vcmp.gt.f32.partialorder %v2668_v54, 14.0 }
 0x15d   : > { %v1025_v63 = vsel %vm817_vm12, %v2635_v4, %v1009_v59  ;;  %1467 = vst [vmem:[%s2681_s14 + $0x10] sm:$0xff] %v1158_v29  ;;  %p2068_p12 = pneg %p2067_p10 }
 0x15e   : > { %v1920_v3 = vpop.eup %1919  ;;  %v851_v5 = vmul.f32 1.442695, %v804_v60  ;;  %1101 = vmatmul.f32.gmra.mxu1 %v1025_v63 }
 0x15f   : > { %v1922_v7 = vpop.eup %1921  ;;  %v979_v8 = vadd.f32 1.0, %v1920_v3  ;;  %v982_v10 = vmul.f32 -0.5, %v1920_v3  ;;  %v985_v0 = vand.u32 2147483647, %v1920_v3  ;;  %p2073_p7 = pnand %p2072_p3, %p2068_p12 }
 0x160   : > { %1923 = vpow2.f32 %v851_v5  ;;  %v972_v32 = vmul.f32 0.6931472, %v1922_v7 }
 0x161   : > { %1925 = vlog2.f32 %v979_v8  ;;  %v983_v58 = vadd.f32 1.0, %v982_v10  ;;  %vm986_vm15 = vcmp.lt.f32.partialorder %v985_v0, 0.0004427343 }
 0x162   : > { %v978_v4 = vsel %vm977_vm13, %v975_v9, %v972_v32  ;;  %v1366_v42 = vpop.f32.mrf.mxu3 }
 0x163   : > { %v1010_v14 = vmul.f32 2.0, %v978_v4  ;;  %v984_v23 = vmul.f32 %v1920_v3, %v983_v58 }
 0x165   : > { %v1026_v56 = vsel %vm818_vm14, %v2646_v48, %v1010_v14 }
 0x166   : > { %v1924_v18 = vpop.eup %1923  ;;  %1104 = vmatmul.f32.gmra.mxu1 %v1026_v56 }
 0x167   : > { %v1926_v20 = vpop.eup %1925  ;;  %v988_v21 = vadd.f32 1.0, %v1924_v18  ;;  %v991_v11 = vmul.f32 -0.5, %v1924_v18  ;;  %v994_v27 = vand.u32 2147483647, %v1924_v18 }
 0x168   : > { %v981_v22 = vmul.f32 0.6931472, %v1926_v20 }
 0x169   : > { %1927 = vlog2.f32 %v988_v21  ;;  %v992_v48 = vadd.f32 1.0, %v991_v11  ;;  %vm995_vm1 = vcmp.lt.f32.partialorder %v994_v27, 0.0004427343 }
 0x16a   : > { %v987_v15 = vsel %vm986_vm15, %v984_v23, %v981_v22 }
 0x16b   : > { %v1011_v25 = vmul.f32 2.0, %v987_v15  ;;  %v993_v62 = vmul.f32 %v1924_v18, %v992_v48 }
 0x16d   : > { %v1027_v26 = vsel %vm819_vm0, %v2656_v38, %v1011_v25  ;;  %v1160_v38 = vpop.f32.mrf.mxu2 }
 0x16e   : > { %1107 = vmatmul.f32.gmra.mxu1 %v1027_v26  ;;  %v1161_v40 = vadd.f32 %v2675_v36, %v1160_v38 }
 0x16f   : > { %v1928_v30 = vpop.eup %1927 }
 0x170   : > { %v990_v16 = vmul.f32 0.6931472, %v1928_v30  ;;  %1468 = vst [vmem:[%s2681_s14 + $0x18] sm:$0xff] %v1161_v40 }
 0x172   : > { %v996_v33 = vsel %vm995_vm1, %v993_v62, %v990_v16 }
 0x173   : > { %v1012_v35 = vmul.f32 2.0, %v996_v33 }
 0x175   : > { %v1028_v39 = vsel %vm820_vm2, %v2665_v57, %v1012_v35  ;;  %v1163_v43 = vpop.f32.mrf.mxu2  ;;  %v1369_v57 = vpop.f32.mrf.mxu3 }
 0x176   : > { %1110 = vmatmul.f32.gmra.mxu1 %v1028_v39  ;;  %v1164_v45 = vadd.f32 %v2675_v36, %v1163_v43 }
 0x178   : > { %1469 = vst [vmem:[%s2681_s14 + $0x20] sm:$0xff] %v1164_v45 }
 0x17b   : > { %v1066_v53 = vpop.f32.mrf.mxu1 }
 0x17c   : > { %v1067_v41 = vadd.f32 %v2698_v13, %v1066_v53 }
 0x17d   : > { %v1166_v34 = vpop.f32.mrf.mxu2  ;;  %v1371_v1 = vpop.f32.mrf.mxu3 }
 0x17e   : > { %v1399_v44 = vmul.f32 %v1359_v51, %v1067_v41  ;;  %v1167_v55 = vadd.f32 %v2675_v36, %v1166_v34 }
 0x180   : > { %v2703_v46 = vadd.f32 %v1399_v44, %v1152_v6  ;;  %1470 = vst [vmem:[%s2681_s14 + $0x28] sm:$0xff] %v1167_v55 }
 0x183   : > { %v1069_v50 = vpop.f32.mrf.mxu1 }
 0x184   : > { %v1070_v52 = vadd.f32 %v2698_v13, %v1069_v50 }
 0x185   : > { %v1374_v32 = vpop.f32.mrf.mxu3 }
 0x186   : > { %v1400_v31 = vmul.f32 %v1361_v24, %v1070_v52 }
 0x188   : > { %v2708_v49 = vadd.f32 %v1400_v31, %v1155_v19 }
 0x189   : > { %v1169_v59 = vpop.f32.mrf.mxu2 }
 0x18a   : > { %v1442_v37 = vpack.c.bf16 %v2708_v49, %v2703_v46  ;;  %v1170_v61 = vadd.f32 %v2675_v36, %v1169_v59 }
 0x18b   : > { %v1072_v54 = vpop.f32.mrf.mxu1 }
 0x18c   : > { %v1073_v47 = vadd.f32 %v2698_v13, %v1072_v54  ;;  %1471 = vst [vmem:[%s2681_s14 + $0x30] sm:$0xff] %v1170_v61 }
 0x18d   : > { %v1376_v18 = vpop.f32.mrf.mxu3 }
 0x18e   : > { %v1401_v60 = vmul.f32 %v1364_v12, %v1073_v47 }
 0x190   : > { %v2715_v63 = vadd.f32 %v1401_v60, %v1158_v29 }
 0x191   : > { %v1172_v5 = vpop.f32.mrf.mxu2 }
 0x192   : > { %v1173_v7 = vadd.f32 %v2675_v36, %v1172_v5 }
 0x193   : > { %v1075_v2 = vpop.f32.mrf.mxu1 }
 0x194   : > { %v1076_v3 = vadd.f32 %v2698_v13, %v1075_v2  ;;  %1472 = vst [vmem:[%s2681_s14 + $0x38] sm:$0xff] %v1173_v7 }
 0x195   : > { %v1379_v26 = vpop.f32.mrf.mxu3 }
 0x196   : > { %v1402_v6 = vmul.f32 %v1366_v42, %v1076_v3 }
 0x198   : > { %v2720_v51 = vadd.f32 %v1402_v6, %v1161_v40 }
 0x199   : > { %v1175_v4 = vpop.f32.mrf.mxu2 }
 0x19a   : > { %v1443_v8 = vpack.c.bf16 %v2720_v51, %v2715_v63  ;;  %v1176_v58 = vadd.f32 %v2675_v36, %v1175_v4 }
 0x19b   : > { %v1078_v9 = vpop.f32.mrf.mxu1 }
 0x19c   : > { %v1079_v10 = vadd.f32 %v2698_v13, %v1078_v9  ;;  %1473 = vst [vmem:[%s2681_s14 + $0x40] sm:$0xff] %v1176_v58 }
 0x19d   : > { %v1381_v12 = vpop.f32.mrf.mxu3 }
 0x19e   : > { %v1403_v14 = vmul.f32 %v1369_v57, %v1079_v10 }
 0x1a0   : > { %v2727_v56 = vadd.f32 %v1403_v14, %v1164_v45 }
 0x1a1   : > { %v1178_v19 = vpop.f32.mrf.mxu2 }
 0x1a2   : > { %v1179_v21 = vadd.f32 %v2675_v36, %v1178_v19 }
 0x1a3   : > { %v1081_v0 = vpop.f32.mrf.mxu1 }
 0x1a4   : > { %v1082_v17 = vadd.f32 %v2698_v13, %v1081_v0  ;;  %1474 = vst [vmem:[%s2681_s14 + $0x48] sm:$0xff] %v1179_v21 }
 0x1a5   : > { %v1384_v43 = vpop.f32.mrf.mxu3 }
 0x1a6   : > { %v1404_v20 = vmul.f32 %v1371_v1, %v1082_v17 }
 0x1a8   : > { %v2732_v22 = vadd.f32 %v1404_v20, %v1167_v55 }
 0x1a9   : > { %v1181_v15 = vpop.f32.mrf.mxu2 }
 0x1aa   : > { %v1444_v23 = vpack.c.bf16 %v2732_v22, %v2727_v56  ;;  %v1182_v48 = vadd.f32 %v2675_v36, %v1181_v15  ;;  %v2180_v56 = vmov 1.0|1.0  }
 0x1ab   : > { %v1084_v11 = vpop.f32.mrf.mxu1 }
 0x1ac   : > { %v1085_v24 = vadd.f32 %v2698_v13, %v1084_v11  ;;  %1475 = vst [vmem:[%s2681_s14 + $0x50] sm:$0xff] %v1182_v48 }
 0x1ad   : > { %v1386_v54 = vpop.f32.mrf.mxu3 }
 0x1ae   : > { %v1405_v25 = vmul.f32 %v1374_v32, %v1085_v24 }
 0x1b0   : > { %v2739_v27 = vadd.f32 %v1405_v25, %v1170_v61 }
 0x1b1   : > { %v1184_v30 = vpop.f32.mrf.mxu2 }
 0x1b2   : > { %v1185_v62 = vadd.f32 %v2675_v36, %v1184_v30 }
 0x1b3   : > { %v1087_v28 = vpop.f32.mrf.mxu1 }
 0x1b4   : > { %v1088_v29 = vadd.f32 %v2698_v13, %v1087_v28  ;;  %1476 = vst [vmem:[%s2681_s14 + $0x58] sm:$0xff] %v1185_v62 }
 0x1b6   : > { %v1406_v16 = vmul.f32 %v1376_v18, %v1088_v29 }
 0x1b8   : > { %v1422_v33 = vadd.f32 %v1406_v16, %v1173_v7  ;;  %v1389_v7 = vpop.f32.mrf.mxu3 }
 0x1b9   : > { %v1187_v40 = vpop.f32.mrf.mxu2 }
 0x1ba   : > { %v1445_v35 = vpack.c.bf16 %v1422_v33, %v2739_v27  ;;  %v1188_v41 = vadd.f32 %v2675_v36, %v1187_v40 }
 0x1bb   : > { %v1090_v39 = vpop.f32.mrf.mxu1 }
 0x1bc   : > { %v1091_v38 = vadd.f32 %v2698_v13, %v1090_v39  ;;  %1477 = vst [vmem:[%s2681_s14 + $0x60] sm:$0xff] %v1188_v41 }
 0x1be   : > { %v1407_v53 = vmul.f32 %v1379_v26, %v1091_v38 }
 0x1c0   : > { %v1423_v42 = vadd.f32 %v1407_v53, %v1176_v58  ;;  %v1391_v14 = vpop.f32.mrf.mxu3 }
 0x1c1   : > { %v1190_v50 = vpop.f32.mrf.mxu2 }
 0x1c2   : > { %v1191_v34 = vadd.f32 %v2675_v36, %v1190_v50 }
 0x1c3   : > { %v1093_v44 = vpop.f32.mrf.mxu1 }
 0x1c4   : > { %v1094_v45 = vadd.f32 %v2698_v13, %v1093_v44  ;;  %1478 = vst [vmem:[%s2681_s14 + $0x68] sm:$0xff] %v1191_v34 }
 0x1c6   : > { %v1408_v52 = vmul.f32 %v1381_v12, %v1094_v45 }
 0x1c8   : > { %v1424_v31 = vadd.f32 %v1408_v52, %v1179_v21  ;;  %v1394_v0 = vpop.f32.mrf.mxu3 }
 0x1c9   : > { %v1193_v47 = vpop.f32.mrf.mxu2 }
 0x1ca   : > { %v1446_v55 = vpack.c.bf16 %v1424_v31, %v1423_v42  ;;  %v1194_v59 = vadd.f32 %v2675_v36, %v1193_v47 }
 0x1cb   : > { %v1096_v57 = vpop.f32.mrf.mxu1 }
 0x1cc   : > { %v1097_v60 = vadd.f32 %v2698_v13, %v1096_v57  ;;  %1479 = vst [vmem:[%s2681_s14 + $0x70] sm:$0xff] %v1194_v59 }
 0x1ce   : > { %v1409_v1 = vmul.f32 %v1384_v43, %v1097_v60 }
 0x1d0   : > { %v1425_v32 = vadd.f32 %v1409_v1, %v1182_v48  ;;  %v1396_v24 = vpop.f32.mrf.mxu3 }
 0x1d1   : > { %v1196_v3 = vpop.f32.mrf.mxu2 }
 0x1d2   : > { %v1197_v6 = vadd.f32 %v2675_v36, %v1196_v3 }
 0x1d3   : > { %v1099_v61 = vpop.f32.mrf.mxu1 }
 0x1d4   : > { %v1100_v2 = vadd.f32 %v2698_v13, %v1099_v61  ;;  %1480 = vst [vmem:[%s2681_s14 + $0x78] sm:$0xff] %v1197_v6 }
 0x1d6   : > { %v1410_v5 = vmul.f32 %v1386_v54, %v1100_v2 }
 0x1d8   : > { %v1426_v9 = vadd.f32 %v1410_v5, %v1185_v62  ;;  %v1435_v62 = vpop.permute.xlu1 %1434 }
 0x1da   : > { %v1447_v10 = vpack.c.bf16 %v1426_v9, %v1425_v32 }
 0x1db   : > { %v1102_v4 = vpop.f32.mrf.mxu1 }
 0x1dc   : > { %v1103_v21 = vadd.f32 %v2698_v13, %v1102_v4 }
 0x1de   : > { %v1411_v48 = vmul.f32 %v1389_v7, %v1103_v21 }
 0x1e0   : > { %v1427_v30 = vadd.f32 %v1411_v48, %v1188_v41 }
 0x1e3   : > { %v1105_v58 = vpop.f32.mrf.mxu1 }
 0x1e4   : > { %v1106_v19 = vadd.f32 %v2698_v13, %v1105_v58 }
 0x1e6   : > { %v1412_v15 = vmul.f32 %v1391_v14, %v1106_v19 }
 0x1e8   : > { %v1428_v28 = vadd.f32 %v1412_v15, %v1191_v34 }
 0x1ea   : > { %v1448_v16 = vpack.c.bf16 %v1428_v28, %v1427_v30 }
 0x1eb   : > { %v1108_v17 = vpop.f32.mrf.mxu1 }
 0x1ec   : > { %v1109_v18 = vadd.f32 %v2698_v13, %v1108_v17 }
 0x1ee   : > { %v1413_v11 = vmul.f32 %v1394_v0, %v1109_v18 }
 0x1f0   : > { %v1429_v26 = vadd.f32 %v1413_v11, %v1194_v59 }
 0x1f3   : > { %v1111_v20 = vpop.f32.mrf.mxu1 }
 0x1f4   : > { %v1112_v36 = vadd.f32 %v2698_v13, %v1111_v20  ;;  %v1862_v13 = vld [vmem:[%s645_s22] ss:$0 sm:$0xff]  ;;  %s1514_s22 = sshll.u32 %s2681_s14, 4  ;;  %s1515_s22 = int_to_ptr.vmem [resolvable:$true] %s1514_s22 }
 0x1f5   : > { %vm1437_vm3 = vcmp.eq.s32.totalorder %v1435_v62, %v1862_v13 }
 0x1f6   : > { %v1414_v25 = vmul.f32 %v1396_v24, %v1112_v36  ;;  %vm1741_vm4 = vmpackc.low %vm1437_vm3, %vm1437_vm3 }
 0x1f8   : > { %v1430_v27 = vadd.f32 %v1414_v25, %v1197_v6 }
 0x1fa   : > { %v1449_v29 = vpack.c.bf16 %v1430_v27, %v1429_v26 }
 0x1fc   : > { %1450 = vmatpush.bf16.msrb.mxu3 %v1449_v29 }
 0x200   : > { %1451 = vmatpush.bf16.msrb.mxu3 %v1448_v16 }
 0x204   : > { %1452 = vmatpush.bf16.msrb.mxu3 %v1447_v10 }
 0x208   : > { %1453 = vmatpush.bf16.msrb.mxu3 %v1446_v55 }
 0x20c   : > { %1454 = vmatpush.bf16.msrb.mxu3 %v1445_v35 }
 0x210   : > { %1455 = vmatpush.bf16.msrb.mxu3 %v1444_v23 }
 0x214   : > { %1456 = vmatpush.bf16.msrb.mxu3 %v1443_v8 }
 0x218   : > { %1457 = vmatpush.bf16.msrb.mxu3 %v1442_v37 }
 0x21b   : > { %1742 = vmatmul.msk.bf16.vlgmr.msrb.gmra.mxu3 %vm1741_vm4, %v2180_v56 }
 0x21c   : > { %2076 = shalt.err (!%p2073_p7)
}
 0x21d   : > { %s2181_s14 = smov 128   ;;  %s2182_s11 = smov 8  }
 0x21e   : > { %1767 = dma.vmem_to_hbm [thread:$0]  (%p2362_p5), %s1515_s22, 2048, %s1517_s10, %s1487_s7, %s2181_s14, %s2181_s14, %s2182_s11  }
 0x21f   : > { %s1745_s18 = sshll.u32 %s2163_s16, 3  ;;  %s1710_s23 = sshll.u32 %s2385_s12, 3 }
 0x220   : > { %s2890_s9 = sld [smem:[#allocation30_spill]]  ;;  %s616_s21 = scalar_lea.vmem [#allocation10], %s1710_s23 }
 0x221   : > { %s1499_s13 = sshll.u32 %s616_s21, 4  ;;  %s1482_s26 = scalar_lea.sflag [#allocation4], %s2385_s12  ;;  %s1500_s13 = int_to_ptr.vmem [resolvable:$true] %s1499_s13 }
 0x226   : > { %s1497_s25 = scalar_lea.hbm %s2890_s9, %s1745_s18  ;;  %s2097_s10 = scalar_lea.hbm %s2890_s9, 16 }
 0x227   : > { %s1501_s29 = sshll.u32 %s1497_s25, 4  ;;  %s1502_s29 = int_to_ptr.hbm [resolvable:$true] %s1501_s29 }
 0x228   : > { %s2091_s0 = sshra.s32 %s1502_s29, 4  ;;  %s2092_s0 = int_to_ptr.hbm [resolvable:$true] %s2091_s0 }
 0x229   : > { %s2093_s1 = scalar_lea.hbm %s2092_s0, 8  ;;  %p2098_p1 = scmp.lt.s32.totalorder %s2092_s0, %s2890_s9 }
 0x22a   : > { %p2094_p9 = scmp.ne.s32.totalorder %s2092_s0, %s2093_s1  ;;  %p2099_p4 = scmp.lt.s32.totalorder %s2097_s10, %s2093_s1 }
 0x22c   : > { %p2095_p2 = pnand %p2094_p9, %p2362_p5  ;;  %p2100_p10 = por %p2099_p4, %p2098_p1 }
 0x22e   : > { %p2096_p8 = pneg %p2095_p2 }
 0x230   : > { %p2101_p12 = pnand %p2100_p10, %p2096_p8 }
 0x29e   : > { %v1459_v46 = vpop.f32.mrf.mxu3 }
 0x29f   : > { %1464 = vst [vmem:[%s616_s21] sm:$0xff] %v1459_v46 }
 0x2a0   : > { %2104 = shalt.err (!%p2101_p12)
}
 0x2a1   : > { %1766 = dma.vmem_to_hbm [thread:$0]  (%p2362_p5), %s1500_s13, 128, %s1502_s29, %s1482_s26  }
 0x2a6   : > { %v1461_v49 = vpop.f32.mrf.mxu3 }
 0x2a7 PF: > { %s2891_s12 = sld [smem:[#allocation18_spill]]  ;;  %p1785_p13 = pnand %p1701_p11, %p2307_p6 }
 0x2a8   : > { %s2893_s18 = sld [smem:[#allocation19_spill]] }
 0x2a9   : > { %p1786_p0 = pneg %p1785_p13 }
 0x2ad   : > { %s1531_s23 = sand.u32 1, %s2891_s12  }
 0x2ae   : > { %s1532_s20 = scalar_lea.sflag [#allocation4], %s1531_s23 }
 0x2af   : > { %2142 = dma.done.wait (%p1786_p0), %s1532_s20, 128  }
 0x2b0   : > { %2144 = vsyncadd (%p1786_p0), %s1532_s20, 4294967168  ;;  %s1542_s0 = scalar_lea.sflag [#allocation12], %s1531_s23 }
 0x2b1   : > { %2146 = dma.done.wait (%p1786_p0), %s1542_s0, 2048  }
 0x2b2   : > { %2148 = vsyncadd (%p1786_p0), %s1542_s0, 4294965248  ;;  %s36_s18 = sadd.s32 1, %s2893_s18   ;;  %s2894_s1 = sld [smem:[#allocation21_spill]] }
 0x2b3   : > { %p33_p3 = scmp.ge.s32.totalorder %s36_s18, 4   ;;  %s2895_s29 = smov %s2155_s30 }
 0x2b4   : > { %s2896_s30 = smov %s2159_s15  ;;  %s2897_s15 = smov %s2371_s27 }
 0x2b5   : > { %s2898_s16 = smov %s2167_s17  ;;  %35 = sbr.rel (!%p33_p3) target bundleno = 20 (0x14), region = 159 }
 0x2b8   : > { %s2899_s17 = smov %s2894_s1 }
 0x2ba   :  { %1548 = vsyncpa [#allocation3], 1 }
 0x2bb   :  { %1550 = vsyncpa [#allocation3 + $0x1], 1 }
 0x2bc   :  { %1551 = vsyncpa [#allocation6], 1 }
 0x2bd   :  { %1552 = vsyncpa [#allocation9], 1 }
 0x2be   :  { %1553 = vsyncpa [#allocation4], 1 }
 0x2bf   :  { %1555 = vsyncpa [#allocation4 + $0x1], 1 }
 0x2c0   :  { %1556 = vsyncpa [#allocation12], 1 }
 0x2c1   :  { %1558 = vsyncpa [#allocation12 + $0x1], 1 }

</bundles_post_ra>
